<compile_context>
chip_gen: v5e
topology: v5e:2x2
jax: 0.10.0
libtpu: 0.0.40
codegen_flags: <defaults>
</compile_context>

<pallas_src>
import jax
import jax.numpy as jnp
import numpy as np
from jax.experimental import pallas as pl
from jax.experimental.pallas import tpu as pltpu

_CB = 8  # every channel axis is zero-padded up to a multiple of 8


def _round_up(x, m):
    return (x + m - 1) // m * m


# ---------------------------------------------------------------------------
# Kernel factory (all spatial / channel sizes are static -> closed over).
# ---------------------------------------------------------------------------
def _make_kernel(S, Sw, R, Wp, Cop, Cip):
    Kup = 4 * Cop
    K1 = 9 * (Cop + Cip)
    K2 = 9 * Cop
    # tap offsets in the flat padded-spatial coordinate (row stride = Wp)
    up_taps = tuple(-(dh * Wp + dw) for dh in (0, 1) for dw in (0, 1))
    c3_taps = tuple((u - 1) * Wp + (v - 1) for u in range(3) for v in range(3))

    def kernel(mask_ref, xd_ref, sk_ref, wup_ref, bup_ref, w1_ref, b1_ref,
               w2_ref, b2_ref, o_ref, im_ref, stage_ref):
        mask = mask_ref[...]                                      # (1, S) f32

        # Zero only the R-wide margins of the staging plane; its interior is
        # fully overwritten before every use (no full-buffer zeroing, and no
        # program_id-gated one-shot init: each core has its own scratch).
        stage_ref[:, 0:R] = jnp.zeros((Cop, R), jnp.bfloat16)
        stage_ref[:, R + S:Sw] = jnp.zeros((Cop, R), jnp.bfloat16)

        def fill(src_ref, row0, taps, c):
            # im2col rows [row0 + t*c, row0 + (t+1)*c) <- src shifted by taps[t]
            for t, off in enumerate(taps):
                im_ref[row0 + t * c:row0 + (t + 1) * c, :] = (
                    src_ref[:, R + off:R + off + S])

        # ---- stage 1: ConvTranspose2d(k=2, s=2) as a 4-tap conv on the
        # zero-dilated input; one (Cop, 4*Cop) @ (4*Cop, S) MXU dot.
        fill(xd_ref, 0, up_taps, Cop)
        up = jnp.dot(wup_ref[...], im_ref[0:Kup, :],
                     preferred_element_type=jnp.float32)           # (Cop, S)
        up = (up + bup_ref[...]) * mask                            # zero halo

        # ---- stage 2: conv3x3 + ReLU over cat([up, skip]); concat folded
        # into one K = 9*(Cop+Cip) im2col dot.
        stage_ref[:, R:R + S] = up.astype(jnp.bfloat16)
        fill(stage_ref, 0, c3_taps, Cop)                           # up taps
        fill(sk_ref, 9 * Cop, c3_taps, Cip)                        # skip taps
        h1 = jnp.dot(w1_ref[...], im_ref[0:K1, :],
                     preferred_element_type=jnp.float32)
        h1 = jnp.maximum(h1 + b1_ref[...], 0.0) * mask

        # ---- stage 3: conv3x3 + ReLU; lane-dense (Cop, S) store.
        stage_ref[:, R:R + S] = h1.astype(jnp.bfloat16)
        fill(stage_ref, 0, c3_taps, Cop)
        h2 = jnp.dot(w2_ref[...], im_ref[0:K2, :],
                     preferred_element_type=jnp.float32)
        o_ref[...] = jnp.maximum(h2 + b2_ref[...], 0.0)

    return kernel


# ---------------------------------------------------------------------------
# DecoderBlock forward (NCHW in / NCHW out, like the PyTorch module).
# ---------------------------------------------------------------------------
def decoder_block_forward(skip_nchw, x_nchw, params):
    """Fused: ConvTranspose2d(k=2,s=2) -> cat([x, skip]) -> Conv3x3+ReLU x2.

    Expected parameter layouts (repacked from PyTorch by the caller):
      w_up: (C_out, C_out, 2, 2)  ConvTranspose2d native (in_ch, out_ch, kh, kw)
      w1  : (3, 3, C_out + C_in, C_out)  HWIO, input channels ordered
            [upsampled(C_out), skip(C_in)]  (== torch.cat([x, skip], dim=1))
      w2  : (3, 3, C_out, C_out)  HWIO;   b_*: (C_out,)
    """
    N, Cin, Hs, Ws = skip_nchw.shape
    Nx, Co, Hx, Wx = x_nchw.shape
    assert N == Nx and Hs == 2 * Hx and Ws == 2 * Wx, (skip_nchw.shape, x_nchw.shape)
    assert params["w_up"].shape == (Co, Co, 2, 2)
    assert params["w1"].shape == (3, 3, Co + Cin, Co)
    assert params["w2"].shape == (3, 3, Co, Co)

    H, W = Hs, Ws
    Hp, Wp = H + 2, W + 2
    S = Hp * Wp           # flat padded full-res spatial -> the lane axis
    R = Wp + 1            # max |tap offset|; lane-axis margin of staged planes
    Sw = S + 2 * R
    Cop = _round_up(Co, _CB)
    Cip = _round_up(Cin, _CB)
    Kup, K1, K2 = 4 * Cop, 9 * (Cop + Cip), 9 * Cop

    f32, bf16 = jnp.float32, jnp.bfloat16

    # --- activations -> channel-major, flat-padded, margin-widened bf16 -----
    # x: zero-dilate 2x (transposed conv == dilation + 2x2 conv), pad spatial
    # by 1, flatten spatial onto lanes, widen by R zeros per side (all in HBM).
    xd = jnp.zeros((N, Co, Hx, 2, Wx, 2), f32)
    xd = xd.at[:, :, :, 0, :, 0].set(x_nchw.astype(f32)).reshape(N, Co, H, W)
    xd = jnp.pad(xd, ((0, 0), (0, Cop - Co), (1, 1), (1, 1))).reshape(N, Cop, S)
    xd = jnp.pad(xd, ((0, 0), (0, 0), (R, R))).astype(bf16)          # (N,Cop,Sw)

    sk = jnp.pad(skip_nchw.astype(f32),
                 ((0, 0), (0, Cip - Cin), (1, 1), (1, 1))).reshape(N, Cip, S)
    sk = jnp.pad(sk, ((0, 0), (0, 0), (R, R))).astype(bf16)          # (N,Cip,Sw)

    # Interior mask: 1 at the H*W valid positions, 0 on the 1-px halo.
    mask = jnp.zeros((Hp, Wp), f32).at[1:H + 1, 1:W + 1].set(1.0).reshape(1, S)

    # --- weights -> (Cop, K) transposed matmul slabs in bf16 -----------------
    w_up = jnp.pad(params["w_up"], ((0, Cop - Co), (0, Cop - Co), (0, 0), (0, 0)))
    wup = jnp.transpose(w_up, (1, 2, 3, 0)).reshape(Cop, Kup).astype(bf16)
    bup = jnp.pad(params["b_up"], (0, Cop - Co)).reshape(Cop, 1).astype(f32)

    w1 = params["w1"]
    w1a = jnp.pad(w1[:, :, :Co, :], ((0, 0), (0, 0), (0, Cop - Co), (0, Cop - Co)))
    w1a = jnp.transpose(w1a, (3, 0, 1, 2)).reshape(Cop, 9 * Cop)
    w1b = jnp.pad(w1[:, :, Co:, :], ((0, 0), (0, 0), (0, Cip - Cin), (0, Cop - Co)))
    w1b = jnp.transpose(w1b, (3, 0, 1, 2)).reshape(Cop, 9 * Cip)
    w1m = jnp.concatenate([w1a, w1b], axis=1).astype(bf16)           # (Cop, K1)
    b1 = jnp.pad(params["b1"], (0, Cop - Co)).reshape(Cop, 1).astype(f32)

    w2p = jnp.pad(params["w2"], ((0, 0), (0, 0), (0, Cop - Co), (0, Cop - Co)))
    w2m = jnp.transpose(w2p, (3, 0, 1, 2)).reshape(Cop, K2).astype(bf16)
    b2 = jnp.pad(params["b2"], (0, Cop - Co)).reshape(Cop, 1).astype(f32)

    kernel = _make_kernel(S, Sw, R, Wp, Cop, Cip)

    out = pl.pallas_call(
        kernel,
        grid=(N,),
        in_specs=[
            pl.BlockSpec((1, S), lambda n: (0, 0)),
            pl.BlockSpec((None, Cop, Sw), lambda n: (n, 0, 0)),
            pl.BlockSpec((None, Cip, Sw), lambda n: (n, 0, 0)),
            pl.BlockSpec((Cop, Kup), lambda n: (0, 0)),
            pl.BlockSpec((Cop, 1), lambda n: (0, 0)),
            pl.BlockSpec((Cop, K1), lambda n: (0, 0)),
            pl.BlockSpec((Cop, 1), lambda n: (0, 0)),
            pl.BlockSpec((Cop, K2), lambda n: (0, 0)),
            pl.BlockSpec((Cop, 1), lambda n: (0, 0)),
        ],
        out_specs=pl.BlockSpec((None, Cop, S), lambda n: (n, 0, 0)),
        out_shape=jax.ShapeDtypeStruct((N, Cop, S), jnp.float32),
        scratch_shapes=[
            pltpu.VMEM((K1, S), jnp.bfloat16),    # im2col slab: one dot per conv
            pltpu.VMEM((Cop, Sw), jnp.bfloat16),  # margin-widened staging plane
        ],
        compiler_params=pltpu.CompilerParams(dimension_semantics=("parallel",)),
    )(mask, xd, sk, wup, bup, w1m, b1, w2m, b2)

    # (N, Cop, Hp*Wp) padded-flat -> NCHW; drop halo + padded channels (XLA).
    return out.reshape(N, Cop, Hp, Wp)[:, :Co, 1:H + 1, 1:W + 1]


# ---------------------------------------------------------------------------
# Pure-JAX reference (f32, for correctness checking).
# ---------------------------------------------------------------------------
def _ref_convt2x2(x, w_t, b_t):
    # out[n, 2i+dy, 2j+dx, co] = sum_ci x[n,i,j,ci] * w_t[ci,co,dy,dx] + b[co]
    N, H, W, Ci = x.shape
    Co = w_t.shape[1]
    y = jnp.einsum("nhwc,coyx->nhwyxo", x, w_t) + b_t
    return y.transpose(0, 1, 3, 2, 4, 5).reshape(N, 2 * H, 2 * W, Co)


def _ref_conv3x3_relu(x, w_hwio, b):
    y = jax.lax.conv_general_dilated(
        x, w_hwio, (1, 1), "SAME",
        dimension_numbers=("NHWC", "HWIO", "NHWC"),
        precision=jax.lax.Precision.HIGHEST,
    )
    return jax.nn.relu(y + b)


def _ref_forward(skip_nchw, x_nchw, params):
    skip = jnp.transpose(skip_nchw, (0, 2, 3, 1))
    x = jnp.transpose(x_nchw, (0, 2, 3, 1))
    x = _ref_convt2x2(x, params["w_up"], params["b_up"])
    x = jnp.concatenate([x, skip], axis=-1)
    x = _ref_conv3x3_relu(x, params["w1"], params["b1"])
    x = _ref_conv3x3_relu(x, params["w2"], params["b2"])
    return jnp.transpose(x, (0, 3, 1, 2))


if __name__ == "__main__":
    N = 2          # batch
    C_in = 4       # skip (encoder) channels
    C_out = 8      # decoder channels
    Hs = Ws = 16   # skip spatial size
    Hx = Wx = 8    # x spatial size (half of skip)

    key = jax.random.PRNGKey(0)
    ks = jax.random.split(key, 8)

    params = {
        # ConvTranspose2d(C_out, C_out, k=2, s=2): weight (Ci, Co, kh, kw)
        "w_up": 0.1 * jax.random.normal(ks[0], (C_out, C_out, 2, 2), jnp.float32),
        "b_up": 0.1 * jax.random.normal(ks[1], (C_out,), jnp.float32),
        # Conv2d(C_in + C_out -> C_out, 3x3, pad=1): HWIO, in-channels ordered
        # [upsampled(C_out), skip(C_in)] (torch.cat order)
        "w1": 0.1 * jax.random.normal(ks[2], (3, 3, C_in + C_out, C_out), jnp.float32),
        "b1": 0.1 * jax.random.normal(ks[3], (C_out,), jnp.float32),
        # Conv2d(C_out -> C_out, 3x3, pad=1): HWIO
        "w2": 0.1 * jax.random.normal(ks[4], (3, 3, C_out, C_out), jnp.float32),
        "b2": 0.1 * jax.random.normal(ks[5], (C_out,), jnp.float32),
    }

    skip = jax.random.normal(ks[6], (N, C_in, Hs, Ws), jnp.float32)   # NCHW
    x = jax.random.normal(ks[7], (N, C_out, Hx, Wx), jnp.float32)     # NCHW

    out = jax.jit(decoder_block_forward)(skip, x, params)
    out = jax.block_until_ready(out)

    ref = jax.block_until_ready(_ref_forward(skip, x, params))
    assert out.shape == (N, C_out, Hs, Ws), out.shape
    # bf16 MXU operands with f32 accumulation -> slightly looser tolerance.
    np.testing.assert_allclose(np.asarray(out), np.asarray(ref), rtol=2e-2, atol=2e-2)

    print("KERNEL_OK")
</pallas_src>

<mosaic_0001>
module attributes {stable_mosaic.version = 11 : i64} {
  func.func @kernel(%arg0: i32, %arg1: memref<1x324xf32, #tpu.memory_space<vmem>>, %arg2: memref<1x8x362xbf16, #tpu.memory_space<vmem>>, %arg3: memref<1x8x362xbf16, #tpu.memory_space<vmem>>, %arg4: memref<8x32xbf16, #tpu.memory_space<vmem>>, %arg5: memref<8x1xf32, #tpu.memory_space<vmem>>, %arg6: memref<8x144xbf16, #tpu.memory_space<vmem>>, %arg7: memref<8x1xf32, #tpu.memory_space<vmem>>, %arg8: memref<8x72xbf16, #tpu.memory_space<vmem>>, %arg9: memref<8x1xf32, #tpu.memory_space<vmem>>, %arg10: memref<1x8x324xf32, #tpu.memory_space<vmem>>, %arg11: memref<144x324xbf16, #tpu.memory_space<vmem>>, %arg12: memref<8x362xbf16, #tpu.memory_space<vmem>>) attributes {dimension_semantics = [#tpu.dimension_semantics<parallel>], iteration_bounds = array<i64: 2>, scalar_prefetch = 0 : i64, scratch_operands = 2 : i64, tpu.core_type = #tpu.core_type<tc>, window_params = [{pipeline_mode = #tpu.pipeline_mode<synchronous>, transform_indices = @transform_0, window_bounds = array<i64: 1, 324>}, {transform_indices = @transform_1, window_bounds = array<i64: 1, 8, 362>}, {transform_indices = @transform_2, window_bounds = array<i64: 1, 8, 362>}, {pipeline_mode = #tpu.pipeline_mode<synchronous>, transform_indices = @transform_3, window_bounds = array<i64: 8, 32>}, {pipeline_mode = #tpu.pipeline_mode<synchronous>, transform_indices = @transform_4, window_bounds = array<i64: 8, 1>}, {pipeline_mode = #tpu.pipeline_mode<synchronous>, transform_indices = @transform_5, window_bounds = array<i64: 8, 144>}, {pipeline_mode = #tpu.pipeline_mode<synchronous>, transform_indices = @transform_6, window_bounds = array<i64: 8, 1>}, {pipeline_mode = #tpu.pipeline_mode<synchronous>, transform_indices = @transform_7, window_bounds = array<i64: 8, 72>}, {pipeline_mode = #tpu.pipeline_mode<synchronous>, transform_indices = @transform_8, window_bounds = array<i64: 8, 1>}, {transform_indices = @transform_9, window_bounds = array<i64: 1, 8, 324>}]} {
    %c0 = arith.constant 0 : index
    %c0_0 = arith.constant 0 : index
    %0 = vector.load %arg1[%c0, %c0_0] : memref<1x324xf32, #tpu.memory_space<vmem>>, vector<1x324xf32>
    %cst = arith.constant 0.000000e+00 : bf16
    %1 = vector.broadcast %cst : bf16 to vector<8x19xbf16>
    %c0_1 = arith.constant 0 : index
    %c0_2 = arith.constant 0 : index
    %2 = vector.load %arg12[%c0_1, %c0_2] : memref<8x362xbf16, #tpu.memory_space<vmem>>, vector<8x19xbf16>
    tpu.vector_store %arg12[%c0_1, %c0_2], %1 {strides = array<i32>} : memref<8x362xbf16, #tpu.memory_space<vmem>>, vector<8x19xbf16>,
    %cst_3 = arith.constant 0.000000e+00 : bf16
    %3 = vector.broadcast %cst_3 : bf16 to vector<8x19xbf16>
    %c0_4 = arith.constant 0 : index
    %c343 = arith.constant 343 : index
    %4 = vector.load %arg12[%c0_4, %c343] : memref<8x362xbf16, #tpu.memory_space<vmem>>, vector<8x19xbf16>
    tpu.vector_store %arg12[%c0_4, %c343], %3 {strides = array<i32>} : memref<8x362xbf16, #tpu.memory_space<vmem>>, vector<8x19xbf16>,
    %c0_5 = arith.constant 0 : index
    %c0_6 = arith.constant 0 : index
    %c19 = arith.constant 19 : index
    %5 = vector.load %arg2[%c0_5, %c0_6, %c19] : memref<1x8x362xbf16, #tpu.memory_space<vmem>>, vector<1x8x324xbf16>
    %6 = vector.shape_cast %5 : vector<1x8x324xbf16> to vector<8x324xbf16>
    %c0_7 = arith.constant 0 : index
    %c0_8 = arith.constant 0 : index
    %7 = vector.load %arg11[%c0_7, %c0_8] : memref<144x324xbf16, #tpu.memory_space<vmem>>, vector<8x324xbf16>
    tpu.vector_store %arg11[%c0_7, %c0_8], %6 {strides = array<i32>} : memref<144x324xbf16, #tpu.memory_space<vmem>>, vector<8x324xbf16>,
    %c0_9 = arith.constant 0 : index
    %c0_10 = arith.constant 0 : index
    %c18 = arith.constant 18 : index
    %8 = vector.load %arg2[%c0_9, %c0_10, %c18] : memref<1x8x362xbf16, #tpu.memory_space<vmem>>, vector<1x8x324xbf16>
    %9 = vector.shape_cast %8 : vector<1x8x324xbf16> to vector<8x324xbf16>
    %c8 = arith.constant 8 : index
    %c0_11 = arith.constant 0 : index
    %10 = vector.load %arg11[%c8, %c0_11] : memref<144x324xbf16, #tpu.memory_space<vmem>>, vector<8x324xbf16>
    tpu.vector_store %arg11[%c8, %c0_11], %9 {strides = array<i32>} : memref<144x324xbf16, #tpu.memory_space<vmem>>, vector<8x324xbf16>,
    %c0_12 = arith.constant 0 : index
    %c0_13 = arith.constant 0 : index
    %c1 = arith.constant 1 : index
    %11 = vector.load %arg2[%c0_12, %c0_13, %c1] : memref<1x8x362xbf16, #tpu.memory_space<vmem>>, vector<1x8x324xbf16>
    %12 = vector.shape_cast %11 : vector<1x8x324xbf16> to vector<8x324xbf16>
    %c16 = arith.constant 16 : index
    %c0_14 = arith.constant 0 : index
    %13 = vector.load %arg11[%c16, %c0_14] : memref<144x324xbf16, #tpu.memory_space<vmem>>, vector<8x324xbf16>
    tpu.vector_store %arg11[%c16, %c0_14], %12 {strides = array<i32>} : memref<144x324xbf16, #tpu.memory_space<vmem>>, vector<8x324xbf16>,
    %c0_15 = arith.constant 0 : index
    %c0_16 = arith.constant 0 : index
    %c0_17 = arith.constant 0 : index
    %14 = vector.load %arg2[%c0_15, %c0_16, %c0_17] : memref<1x8x362xbf16, #tpu.memory_space<vmem>>, vector<1x8x324xbf16>
    %15 = vector.shape_cast %14 : vector<1x8x324xbf16> to vector<8x324xbf16>
    %c24 = arith.constant 24 : index
    %c0_18 = arith.constant 0 : index
    %16 = vector.load %arg11[%c24, %c0_18] : memref<144x324xbf16, #tpu.memory_space<vmem>>, vector<8x324xbf16>
    tpu.vector_store %arg11[%c24, %c0_18], %15 {strides = array<i32>} : memref<144x324xbf16, #tpu.memory_space<vmem>>, vector<8x324xbf16>,
    %c0_19 = arith.constant 0 : index
    %c0_20 = arith.constant 0 : index
    %17 = vector.load %arg4[%c0_19, %c0_20] : memref<8x32xbf16, #tpu.memory_space<vmem>>, vector<8x32xbf16>
    %c0_21 = arith.constant 0 : index
    %c0_22 = arith.constant 0 : index
    %18 = vector.load %arg11[%c0_21, %c0_22] : memref<144x324xbf16, #tpu.memory_space<vmem>>, vector<32x324xbf16>
    %cst_23 = arith.constant dense<0.000000e+00> : vector<8x324xf32>
    %19 = tpu.matmul %17, %18, %cst_23 {dimension_numbers = #tpu.dot_dimension_numbers<[1], [0], [0], [1], [0, 0, 1, 1], [], []>} : vector<8x32xbf16>, vector<32x324xbf16>, vector<8x324xf32> -> vector<8x324xf32>
    %c0_24 = arith.constant 0 : index
    %c0_25 = arith.constant 0 : index
    %20 = vector.load %arg5[%c0_24, %c0_25] : memref<8x1xf32, #tpu.memory_space<vmem>>, vector<8x1xf32>
    %21 = vector.broadcast %20 : vector<8x1xf32> to vector<8x324xf32>
    %22 = arith.addf %19, %21 : vector<8x324xf32>
    %23 = vector.broadcast %0 : vector<1x324xf32> to vector<8x324xf32>
    %24 = arith.mulf %22, %23 : vector<8x324xf32>
    %25 = arith.truncf %24 : vector<8x324xf32> to vector<8x324xbf16>
    %c0_26 = arith.constant 0 : index
    %c19_27 = arith.constant 19 : index
    %26 = vector.load %arg12[%c0_26, %c19_27] : memref<8x362xbf16, #tpu.memory_space<vmem>>, vector<8x324xbf16>
    tpu.vector_store %arg12[%c0_26, %c19_27], %25 {strides = array<i32>} : memref<8x362xbf16, #tpu.memory_space<vmem>>, vector<8x324xbf16>,
    %c0_28 = arith.constant 0 : index
    %c0_29 = arith.constant 0 : index
    %27 = vector.load %arg12[%c0_28, %c0_29] : memref<8x362xbf16, #tpu.memory_space<vmem>>, vector<8x324xbf16>
    %c0_30 = arith.constant 0 : index
    %c0_31 = arith.constant 0 : index
    %28 = vector.load %arg11[%c0_30, %c0_31] : memref<144x324xbf16, #tpu.memory_space<vmem>>, vector<8x324xbf16>
    tpu.vector_store %arg11[%c0_30, %c0_31], %27 {strides = array<i32>} : memref<144x324xbf16, #tpu.memory_space<vmem>>, vector<8x324xbf16>,
    %c0_32 = arith.constant 0 : index
    %c1_33 = arith.constant 1 : index
    %29 = vector.load %arg12[%c0_32, %c1_33] : memref<8x362xbf16, #tpu.memory_space<vmem>>, vector<8x324xbf16>
    %c8_34 = arith.constant 8 : index
    %c0_35 = arith.constant 0 : index
    %30 = vector.load %arg11[%c8_34, %c0_35] : memref<144x324xbf16, #tpu.memory_space<vmem>>, vector<8x324xbf16>
    tpu.vector_store %arg11[%c8_34, %c0_35], %29 {strides = array<i32>} : memref<144x324xbf16, #tpu.memory_space<vmem>>, vector<8x324xbf16>,
    %c0_36 = arith.constant 0 : index
    %c2 = arith.constant 2 : index
    %31 = vector.load %arg12[%c0_36, %c2] : memref<8x362xbf16, #tpu.memory_space<vmem>>, vector<8x324xbf16>
    %c16_37 = arith.constant 16 : index
    %c0_38 = arith.constant 0 : index
    %32 = vector.load %arg11[%c16_37, %c0_38] : memref<144x324xbf16, #tpu.memory_space<vmem>>, vector<8x324xbf16>
    tpu.vector_store %arg11[%c16_37, %c0_38], %31 {strides = array<i32>} : memref<144x324xbf16, #tpu.memory_space<vmem>>, vector<8x324xbf16>,
    %c0_39 = arith.constant 0 : index
    %c18_40 = arith.constant 18 : index
    %33 = vector.load %arg12[%c0_39, %c18_40] : memref<8x362xbf16, #tpu.memory_space<vmem>>, vector<8x324xbf16>
    %c24_41 = arith.constant 24 : index
    %c0_42 = arith.constant 0 : index
    %34 = vector.load %arg11[%c24_41, %c0_42] : memref<144x324xbf16, #tpu.memory_space<vmem>>, vector<8x324xbf16>
    tpu.vector_store %arg11[%c24_41, %c0_42], %33 {strides = array<i32>} : memref<144x324xbf16, #tpu.memory_space<vmem>>, vector<8x324xbf16>,
    %c0_43 = arith.constant 0 : index
    %c19_44 = arith.constant 19 : index
    %35 = vector.load %arg12[%c0_43, %c19_44] : memref<8x362xbf16, #tpu.memory_space<vmem>>, vector<8x324xbf16>
    %c32 = arith.constant 32 : index
    %c0_45 = arith.constant 0 : index
    %36 = vector.load %arg11[%c32, %c0_45] : memref<144x324xbf16, #tpu.memory_space<vmem>>, vector<8x324xbf16>
    tpu.vector_store %arg11[%c32, %c0_45], %35 {strides = array<i32>} : memref<144x324xbf16, #tpu.memory_space<vmem>>, vector<8x324xbf16>,
    %c0_46 = arith.constant 0 : index
    %c20 = arith.constant 20 : index
    %37 = vector.load %arg12[%c0_46, %c20] : memref<8x362xbf16, #tpu.memory_space<vmem>>, vector<8x324xbf16>
    %c40 = arith.constant 40 : index
    %c0_47 = arith.constant 0 : index
    %38 = vector.load %arg11[%c40, %c0_47] : memref<144x324xbf16, #tpu.memory_space<vmem>>, vector<8x324xbf16>
    tpu.vector_store %arg11[%c40, %c0_47], %37 {strides = array<i32>} : memref<144x324xbf16, #tpu.memory_space<vmem>>, vector<8x324xbf16>,
    %c0_48 = arith.constant 0 : index
    %c36 = arith.constant 36 : index
    %39 = vector.load %arg12[%c0_48, %c36] : memref<8x362xbf16, #tpu.memory_space<vmem>>, vector<8x324xbf16>
    %c48 = arith.constant 48 : index
    %c0_49 = arith.constant 0 : index
    %40 = vector.load %arg11[%c48, %c0_49] : memref<144x324xbf16, #tpu.memory_space<vmem>>, vector<8x324xbf16>
    tpu.vector_store %arg11[%c48, %c0_49], %39 {strides = array<i32>} : memref<144x324xbf16, #tpu.memory_space<vmem>>, vector<8x324xbf16>,
    %c0_50 = arith.constant 0 : index
    %c37 = arith.constant 37 : index
    %41 = vector.load %arg12[%c0_50, %c37] : memref<8x362xbf16, #tpu.memory_space<vmem>>, vector<8x324xbf16>
    %c56 = arith.constant 56 : index
    %c0_51 = arith.constant 0 : index
    %42 = vector.load %arg11[%c56, %c0_51] : memref<144x324xbf16, #tpu.memory_space<vmem>>, vector<8x324xbf16>
    tpu.vector_store %arg11[%c56, %c0_51], %41 {strides = array<i32>} : memref<144x324xbf16, #tpu.memory_space<vmem>>, vector<8x324xbf16>,
    %c0_52 = arith.constant 0 : index
    %c38 = arith.constant 38 : index
    %43 = vector.load %arg12[%c0_52, %c38] : memref<8x362xbf16, #tpu.memory_space<vmem>>, vector<8x324xbf16>
    %c64 = arith.constant 64 : index
    %c0_53 = arith.constant 0 : index
    %44 = vector.load %arg11[%c64, %c0_53] : memref<144x324xbf16, #tpu.memory_space<vmem>>, vector<8x324xbf16>
    tpu.vector_store %arg11[%c64, %c0_53], %43 {strides = array<i32>} : memref<144x324xbf16, #tpu.memory_space<vmem>>, vector<8x324xbf16>,
    %c0_54 = arith.constant 0 : index
    %c0_55 = arith.constant 0 : index
    %c0_56 = arith.constant 0 : index
    %45 = vector.load %arg3[%c0_54, %c0_55, %c0_56] : memref<1x8x362xbf16, #tpu.memory_space<vmem>>, vector<1x8x324xbf16>
    %46 = vector.shape_cast %45 : vector<1x8x324xbf16> to vector<8x324xbf16>
    %c72 = arith.constant 72 : index
    %c0_57 = arith.constant 0 : index
    %47 = vector.load %arg11[%c72, %c0_57] : memref<144x324xbf16, #tpu.memory_space<vmem>>, vector<8x324xbf16>
    tpu.vector_store %arg11[%c72, %c0_57], %46 {strides = array<i32>} : memref<144x324xbf16, #tpu.memory_space<vmem>>, vector<8x324xbf16>,
    %c0_58 = arith.constant 0 : index
    %c0_59 = arith.constant 0 : index
    %c1_60 = arith.constant 1 : index
    %48 = vector.load %arg3[%c0_58, %c0_59, %c1_60] : memref<1x8x362xbf16, #tpu.memory_space<vmem>>, vector<1x8x324xbf16>
    %49 = vector.shape_cast %48 : vector<1x8x324xbf16> to vector<8x324xbf16>
    %c80 = arith.constant 80 : index
    %c0_61 = arith.constant 0 : index
    %50 = vector.load %arg11[%c80, %c0_61] : memref<144x324xbf16, #tpu.memory_space<vmem>>, vector<8x324xbf16>
    tpu.vector_store %arg11[%c80, %c0_61], %49 {strides = array<i32>} : memref<144x324xbf16, #tpu.memory_space<vmem>>, vector<8x324xbf16>,
    %c0_62 = arith.constant 0 : index
    %c0_63 = arith.constant 0 : index
    %c2_64 = arith.constant 2 : index
    %51 = vector.load %arg3[%c0_62, %c0_63, %c2_64] : memref<1x8x362xbf16, #tpu.memory_space<vmem>>, vector<1x8x324xbf16>
    %52 = vector.shape_cast %51 : vector<1x8x324xbf16> to vector<8x324xbf16>
    %c88 = arith.constant 88 : index
    %c0_65 = arith.constant 0 : index
    %53 = vector.load %arg11[%c88, %c0_65] : memref<144x324xbf16, #tpu.memory_space<vmem>>, vector<8x324xbf16>
    tpu.vector_store %arg11[%c88, %c0_65], %52 {strides = array<i32>} : memref<144x324xbf16, #tpu.memory_space<vmem>>, vector<8x324xbf16>,
    %c0_66 = arith.constant 0 : index
    %c0_67 = arith.constant 0 : index
    %c18_68 = arith.constant 18 : index
    %54 = vector.load %arg3[%c0_66, %c0_67, %c18_68] : memref<1x8x362xbf16, #tpu.memory_space<vmem>>, vector<1x8x324xbf16>
    %55 = vector.shape_cast %54 : vector<1x8x324xbf16> to vector<8x324xbf16>
    %c96 = arith.constant 96 : index
    %c0_69 = arith.constant 0 : index
    %56 = vector.load %arg11[%c96, %c0_69] : memref<144x324xbf16, #tpu.memory_space<vmem>>, vector<8x324xbf16>
    tpu.vector_store %arg11[%c96, %c0_69], %55 {strides = array<i32>} : memref<144x324xbf16, #tpu.memory_space<vmem>>, vector<8x324xbf16>,
    %c0_70 = arith.constant 0 : index
    %c0_71 = arith.constant 0 : index
    %c19_72 = arith.constant 19 : index
    %57 = vector.load %arg3[%c0_70, %c0_71, %c19_72] : memref<1x8x362xbf16, #tpu.memory_space<vmem>>, vector<1x8x324xbf16>
    %58 = vector.shape_cast %57 : vector<1x8x324xbf16> to vector<8x324xbf16>
    %c104 = arith.constant 104 : index
    %c0_73 = arith.constant 0 : index
    %59 = vector.load %arg11[%c104, %c0_73] : memref<144x324xbf16, #tpu.memory_space<vmem>>, vector<8x324xbf16>
    tpu.vector_store %arg11[%c104, %c0_73], %58 {strides = array<i32>} : memref<144x324xbf16, #tpu.memory_space<vmem>>, vector<8x324xbf16>,
    %c0_74 = arith.constant 0 : index
    %c0_75 = arith.constant 0 : index
    %c20_76 = arith.constant 20 : index
    %60 = vector.load %arg3[%c0_74, %c0_75, %c20_76] : memref<1x8x362xbf16, #tpu.memory_space<vmem>>, vector<1x8x324xbf16>
    %61 = vector.shape_cast %60 : vector<1x8x324xbf16> to vector<8x324xbf16>
    %c112 = arith.constant 112 : index
    %c0_77 = arith.constant 0 : index
    %62 = vector.load %arg11[%c112, %c0_77] : memref<144x324xbf16, #tpu.memory_space<vmem>>, vector<8x324xbf16>
    tpu.vector_store %arg11[%c112, %c0_77], %61 {strides = array<i32>} : memref<144x324xbf16, #tpu.memory_space<vmem>>, vector<8x324xbf16>,
    %c0_78 = arith.constant 0 : index
    %c0_79 = arith.constant 0 : index
    %c36_80 = arith.constant 36 : index
    %63 = vector.load %arg3[%c0_78, %c0_79, %c36_80] : memref<1x8x362xbf16, #tpu.memory_space<vmem>>, vector<1x8x324xbf16>
    %64 = vector.shape_cast %63 : vector<1x8x324xbf16> to vector<8x324xbf16>
    %c120 = arith.constant 120 : index
    %c0_81 = arith.constant 0 : index
    %65 = vector.load %arg11[%c120, %c0_81] : memref<144x324xbf16, #tpu.memory_space<vmem>>, vector<8x324xbf16>
    tpu.vector_store %arg11[%c120, %c0_81], %64 {strides = array<i32>} : memref<144x324xbf16, #tpu.memory_space<vmem>>, vector<8x324xbf16>,
    %c0_82 = arith.constant 0 : index
    %c0_83 = arith.constant 0 : index
    %c37_84 = arith.constant 37 : index
    %66 = vector.load %arg3[%c0_82, %c0_83, %c37_84] : memref<1x8x362xbf16, #tpu.memory_space<vmem>>, vector<1x8x324xbf16>
    %67 = vector.shape_cast %66 : vector<1x8x324xbf16> to vector<8x324xbf16>
    %c128 = arith.constant 128 : index
    %c0_85 = arith.constant 0 : index
    %68 = vector.load %arg11[%c128, %c0_85] : memref<144x324xbf16, #tpu.memory_space<vmem>>, vector<8x324xbf16>
    tpu.vector_store %arg11[%c128, %c0_85], %67 {strides = array<i32>} : memref<144x324xbf16, #tpu.memory_space<vmem>>, vector<8x324xbf16>,
    %c0_86 = arith.constant 0 : index
    %c0_87 = arith.constant 0 : index
    %c38_88 = arith.constant 38 : index
    %69 = vector.load %arg3[%c0_86, %c0_87, %c38_88] : memref<1x8x362xbf16, #tpu.memory_space<vmem>>, vector<1x8x324xbf16>
    %70 = vector.shape_cast %69 : vector<1x8x324xbf16> to vector<8x324xbf16>
    %c136 = arith.constant 136 : index
    %c0_89 = arith.constant 0 : index
    %71 = vector.load %arg11[%c136, %c0_89] : memref<144x324xbf16, #tpu.memory_space<vmem>>, vector<8x324xbf16>
    tpu.vector_store %arg11[%c136, %c0_89], %70 {strides = array<i32>} : memref<144x324xbf16, #tpu.memory_space<vmem>>, vector<8x324xbf16>,
    %c0_90 = arith.constant 0 : index
    %c0_91 = arith.constant 0 : index
    %72 = vector.load %arg6[%c0_90, %c0_91] : memref<8x144xbf16, #tpu.memory_space<vmem>>, vector<8x144xbf16>
    %c0_92 = arith.constant 0 : index
    %c0_93 = arith.constant 0 : index
    %73 = vector.load %arg11[%c0_92, %c0_93] : memref<144x324xbf16, #tpu.memory_space<vmem>>, vector<144x324xbf16>
    %cst_94 = arith.constant dense<0.000000e+00> : vector<8x324xf32>
    %74 = tpu.matmul %72, %73, %cst_94 {dimension_numbers = #tpu.dot_dimension_numbers<[1], [0], [0], [1], [0, 0, 1, 1], [], []>} : vector<8x144xbf16>, vector<144x324xbf16>, vector<8x324xf32> -> vector<8x324xf32>
    %c0_95 = arith.constant 0 : index
    %c0_96 = arith.constant 0 : index
    %75 = vector.load %arg7[%c0_95, %c0_96] : memref<8x1xf32, #tpu.memory_space<vmem>>, vector<8x1xf32>
    %76 = vector.broadcast %75 : vector<8x1xf32> to vector<8x324xf32>
    %77 = arith.addf %74, %76 : vector<8x324xf32>
    %cst_97 = arith.constant 0.000000e+00 : f32
    %78 = vector.broadcast %cst_97 : f32 to vector<8x324xf32>
    %79 = arith.maximumf %77, %78 : vector<8x324xf32>
    %80 = vector.broadcast %0 : vector<1x324xf32> to vector<8x324xf32>
    %81 = arith.mulf %79, %80 : vector<8x324xf32>
    %82 = arith.truncf %81 : vector<8x324xf32> to vector<8x324xbf16>
    %c0_98 = arith.constant 0 : index
    %c19_99 = arith.constant 19 : index
    %83 = vector.load %arg12[%c0_98, %c19_99] : memref<8x362xbf16, #tpu.memory_space<vmem>>, vector<8x324xbf16>
    tpu.vector_store %arg12[%c0_98, %c19_99], %82 {strides = array<i32>} : memref<8x362xbf16, #tpu.memory_space<vmem>>, vector<8x324xbf16>,
    %c0_100 = arith.constant 0 : index
    %c0_101 = arith.constant 0 : index
    %84 = vector.load %arg12[%c0_100, %c0_101] : memref<8x362xbf16, #tpu.memory_space<vmem>>, vector<8x324xbf16>
    %c0_102 = arith.constant 0 : index
    %c0_103 = arith.constant 0 : index
    %85 = vector.load %arg11[%c0_102, %c0_103] : memref<144x324xbf16, #tpu.memory_space<vmem>>, vector<8x324xbf16>
    tpu.vector_store %arg11[%c0_102, %c0_103], %84 {strides = array<i32>} : memref<144x324xbf16, #tpu.memory_space<vmem>>, vector<8x324xbf16>,
    %c0_104 = arith.constant 0 : index
    %c1_105 = arith.constant 1 : index
    %86 = vector.load %arg12[%c0_104, %c1_105] : memref<8x362xbf16, #tpu.memory_space<vmem>>, vector<8x324xbf16>
    %c8_106 = arith.constant 8 : index
    %c0_107 = arith.constant 0 : index
    %87 = vector.load %arg11[%c8_106, %c0_107] : memref<144x324xbf16, #tpu.memory_space<vmem>>, vector<8x324xbf16>
    tpu.vector_store %arg11[%c8_106, %c0_107], %86 {strides = array<i32>} : memref<144x324xbf16, #tpu.memory_space<vmem>>, vector<8x324xbf16>,
    %c0_108 = arith.constant 0 : index
    %c2_109 = arith.constant 2 : index
    %88 = vector.load %arg12[%c0_108, %c2_109] : memref<8x362xbf16, #tpu.memory_space<vmem>>, vector<8x324xbf16>
    %c16_110 = arith.constant 16 : index
    %c0_111 = arith.constant 0 : index
    %89 = vector.load %arg11[%c16_110, %c0_111] : memref<144x324xbf16, #tpu.memory_space<vmem>>, vector<8x324xbf16>
    tpu.vector_store %arg11[%c16_110, %c0_111], %88 {strides = array<i32>} : memref<144x324xbf16, #tpu.memory_space<vmem>>, vector<8x324xbf16>,
    %c0_112 = arith.constant 0 : index
    %c18_113 = arith.constant 18 : index
    %90 = vector.load %arg12[%c0_112, %c18_113] : memref<8x362xbf16, #tpu.memory_space<vmem>>, vector<8x324xbf16>
    %c24_114 = arith.constant 24 : index
    %c0_115 = arith.constant 0 : index
    %91 = vector.load %arg11[%c24_114, %c0_115] : memref<144x324xbf16, #tpu.memory_space<vmem>>, vector<8x324xbf16>
    tpu.vector_store %arg11[%c24_114, %c0_115], %90 {strides = array<i32>} : memref<144x324xbf16, #tpu.memory_space<vmem>>, vector<8x324xbf16>,
    %c0_116 = arith.constant 0 : index
    %c19_117 = arith.constant 19 : index
    %92 = vector.load %arg12[%c0_116, %c19_117] : memref<8x362xbf16, #tpu.memory_space<vmem>>, vector<8x324xbf16>
    %c32_118 = arith.constant 32 : index
    %c0_119 = arith.constant 0 : index
    %93 = vector.load %arg11[%c32_118, %c0_119] : memref<144x324xbf16, #tpu.memory_space<vmem>>, vector<8x324xbf16>
    tpu.vector_store %arg11[%c32_118, %c0_119], %92 {strides = array<i32>} : memref<144x324xbf16, #tpu.memory_space<vmem>>, vector<8x324xbf16>,
    %c0_120 = arith.constant 0 : index
    %c20_121 = arith.constant 20 : index
    %94 = vector.load %arg12[%c0_120, %c20_121] : memref<8x362xbf16, #tpu.memory_space<vmem>>, vector<8x324xbf16>
    %c40_122 = arith.constant 40 : index
    %c0_123 = arith.constant 0 : index
    %95 = vector.load %arg11[%c40_122, %c0_123] : memref<144x324xbf16, #tpu.memory_space<vmem>>, vector<8x324xbf16>
    tpu.vector_store %arg11[%c40_122, %c0_123], %94 {strides = array<i32>} : memref<144x324xbf16, #tpu.memory_space<vmem>>, vector<8x324xbf16>,
    %c0_124 = arith.constant 0 : index
    %c36_125 = arith.constant 36 : index
    %96 = vector.load %arg12[%c0_124, %c36_125] : memref<8x362xbf16, #tpu.memory_space<vmem>>, vector<8x324xbf16>
    %c48_126 = arith.constant 48 : index
    %c0_127 = arith.constant 0 : index
    %97 = vector.load %arg11[%c48_126, %c0_127] : memref<144x324xbf16, #tpu.memory_space<vmem>>, vector<8x324xbf16>
    tpu.vector_store %arg11[%c48_126, %c0_127], %96 {strides = array<i32>} : memref<144x324xbf16, #tpu.memory_space<vmem>>, vector<8x324xbf16>,
    %c0_128 = arith.constant 0 : index
    %c37_129 = arith.constant 37 : index
    %98 = vector.load %arg12[%c0_128, %c37_129] : memref<8x362xbf16, #tpu.memory_space<vmem>>, vector<8x324xbf16>
    %c56_130 = arith.constant 56 : index
    %c0_131 = arith.constant 0 : index
    %99 = vector.load %arg11[%c56_130, %c0_131] : memref<144x324xbf16, #tpu.memory_space<vmem>>, vector<8x324xbf16>
    tpu.vector_store %arg11[%c56_130, %c0_131], %98 {strides = array<i32>} : memref<144x324xbf16, #tpu.memory_space<vmem>>, vector<8x324xbf16>,
    %c0_132 = arith.constant 0 : index
    %c38_133 = arith.constant 38 : index
    %100 = vector.load %arg12[%c0_132, %c38_133] : memref<8x362xbf16, #tpu.memory_space<vmem>>, vector<8x324xbf16>
    %c64_134 = arith.constant 64 : index
    %c0_135 = arith.constant 0 : index
    %101 = vector.load %arg11[%c64_134, %c0_135] : memref<144x324xbf16, #tpu.memory_space<vmem>>, vector<8x324xbf16>
    tpu.vector_store %arg11[%c64_134, %c0_135], %100 {strides = array<i32>} : memref<144x324xbf16, #tpu.memory_space<vmem>>, vector<8x324xbf16>,
    %c0_136 = arith.constant 0 : index
    %c0_137 = arith.constant 0 : index
    %102 = vector.load %arg8[%c0_136, %c0_137] : memref<8x72xbf16, #tpu.memory_space<vmem>>, vector<8x72xbf16>
    %c0_138 = arith.constant 0 : index
    %c0_139 = arith.constant 0 : index
    %103 = vector.load %arg11[%c0_138, %c0_139] : memref<144x324xbf16, #tpu.memory_space<vmem>>, vector<72x324xbf16>
    %cst_140 = arith.constant dense<0.000000e+00> : vector<8x324xf32>
    %104 = tpu.matmul %102, %103, %cst_140 {dimension_numbers = #tpu.dot_dimension_numbers<[1], [0], [0], [1], [0, 0, 1, 1], [], []>} : vector<8x72xbf16>, vector<72x324xbf16>, vector<8x324xf32> -> vector<8x324xf32>
    %c0_141 = arith.constant 0 : index
    %c0_142 = arith.constant 0 : index
    %105 = vector.load %arg9[%c0_141, %c0_142] : memref<8x1xf32, #tpu.memory_space<vmem>>, vector<8x1xf32>
    %106 = vector.broadcast %105 : vector<8x1xf32> to vector<8x324xf32>
    %107 = arith.addf %104, %106 : vector<8x324xf32>
    %cst_143 = arith.constant 0.000000e+00 : f32
    %108 = vector.broadcast %cst_143 : f32 to vector<8x324xf32>
    %109 = arith.maximumf %107, %108 : vector<8x324xf32>
    %c0_144 = arith.constant 0 : index
    %c0_145 = arith.constant 0 : index
    %c0_146 = arith.constant 0 : index
    %110 = vector.load %arg10[%c0_144, %c0_145, %c0_146] : memref<1x8x324xf32, #tpu.memory_space<vmem>>, vector<1x8x324xf32>
    %111 = vector.shape_cast %110 : vector<1x8x324xf32> to vector<8x324xf32>
    %112 = vector.shape_cast %109 : vector<8x324xf32> to vector<1x8x324xf32>
    tpu.vector_store %arg10[%c0_144, %c0_145, %c0_146], %112 {strides = array<i32>} : memref<1x8x324xf32, #tpu.memory_space<vmem>>, vector<1x8x324xf32>,
    return
  }
  func.func @transform_0(%arg0: i32) -> (i32, i32) {
    %c0_i32 = arith.constant 0 : i32
    %c0_i32_0 = arith.constant 0 : i32
    %c0_i32_1 = arith.constant 0 : i32
    return %c0_i32, %c0_i32_0 : i32, i32
  }
  func.func @transform_1(%arg0: i32) -> (i32, i32, i32) {
    %c0_i32 = arith.constant 0 : i32
    %c0_i32_0 = arith.constant 0 : i32
    %c0_i32_1 = arith.constant 0 : i32
    return %arg0, %c0_i32, %c0_i32_0 : i32, i32, i32
  }
  func.func @transform_2(%arg0: i32) -> (i32, i32, i32) {
    %c0_i32 = arith.constant 0 : i32
    %c0_i32_0 = arith.constant 0 : i32
    %c0_i32_1 = arith.constant 0 : i32
    return %arg0, %c0_i32, %c0_i32_0 : i32, i32, i32
  }
  func.func @transform_3(%arg0: i32) -> (i32, i32) {
    %c0_i32 = arith.constant 0 : i32
    %c0_i32_0 = arith.constant 0 : i32
    %c0_i32_1 = arith.constant 0 : i32
    return %c0_i32, %c0_i32_0 : i32, i32
  }
  func.func @transform_4(%arg0: i32) -> (i32, i32) {
    %c0_i32 = arith.constant 0 : i32
    %c0_i32_0 = arith.constant 0 : i32
    %c0_i32_1 = arith.constant 0 : i32
    return %c0_i32, %c0_i32_0 : i32, i32
  }
  func.func @transform_5(%arg0: i32) -> (i32, i32) {
    %c0_i32 = arith.constant 0 : i32
    %c0_i32_0 = arith.constant 0 : i32
    %c0_i32_1 = arith.constant 0 : i32
    return %c0_i32, %c0_i32_0 : i32, i32
  }
  func.func @transform_6(%arg0: i32) -> (i32, i32) {
    %c0_i32 = arith.constant 0 : i32
    %c0_i32_0 = arith.constant 0 : i32
    %c0_i32_1 = arith.constant 0 : i32
    return %c0_i32, %c0_i32_0 : i32, i32
  }
  func.func @transform_7(%arg0: i32) -> (i32, i32) {
    %c0_i32 = arith.constant 0 : i32
    %c0_i32_0 = arith.constant 0 : i32
    %c0_i32_1 = arith.constant 0 : i32
    return %c0_i32, %c0_i32_0 : i32, i32
  }
  func.func @transform_8(%arg0: i32) -> (i32, i32) {
    %c0_i32 = arith.constant 0 : i32
    %c0_i32_0 = arith.constant 0 : i32
    %c0_i32_1 = arith.constant 0 : i32
    return %c0_i32, %c0_i32_0 : i32, i32
  }
  func.func @transform_9(%arg0: i32) -> (i32, i32, i32) {
    %c0_i32 = arith.constant 0 : i32
    %c0_i32_0 = arith.constant 0 : i32
    %c0_i32_1 = arith.constant 0 : i32
    return %arg0, %c0_i32, %c0_i32_0 : i32, i32, i32
  }
}

</mosaic_0001>

<bundles_post_ra>
// kernel: decoder_block_forward.1
= control target key start
LH: loop header
LB: loop body
LE: loop exit
PB: predicated region body
PF: predicated region fallthrough
CT: control target
= control target key end

     0   :  { %s1791_s30 = smov 0   ;;  %s2063_s0 = inlined_call_operand.vmem [shape: f32[1,324], index: 0, kind: input, shape index: {}]   ;;  %s2064_s1 = inlined_call_operand.vmem [shape: bf16[2,8,362], index: 1, kind: input, shape index: {}]   ;;  %s2065_s2 = inlined_call_operand.vmem [shape: bf16[2,8,362], index: 2, kind: input, shape index: {}]   ;;  %s2066_s3 = inlined_call_operand.vmem [shape: bf16[8,32], index: 3, kind: input, shape index: {}]   ;;  %s2067_s4 = inlined_call_operand.vmem [shape: f32[8,1], index: 4, kind: input, shape index: {}]   ;;  %s2068_s5 = inlined_call_operand.vmem [shape: bf16[8,144], index: 5, kind: input, shape index: {}]   ;;  %s2069_s6 = inlined_call_operand.vmem [shape: f32[8,1], index: 6, kind: input, shape index: {}]   ;;  %s2070_s7 = inlined_call_operand.vmem [shape: bf16[8,72], index: 7, kind: input, shape index: {}]   ;;  %s2071_s8 = inlined_call_operand.vmem [shape: f32[8,1], index: 8, kind: input, shape index: {}]   ;;  %s2072_s9 = inlined_call_operand.vmem [shape: f32[2,8,324], index: 9, kind: output, shape index: {}]  }
   0x1 LB: > { %s1457_s10 = sadd.s32 4294967295, %s1729_s30   ;;  %p1461_p0 = scmp.ge.s32.totalorder %s1729_s30, 1  ;;  %s1729_s30 = sphi %s1791_s30, %s19_s30  }
   0x2   : > { %p297_p1 = scmp.lt.s32.totalorder %s1729_s30, 3 }
   0x4   : > { %p298_p2 = pnand %p1461_p0, %p297_p1 }
   0x5   : > { %p338_p3 = scmp.lt.s32.totalorder (!%p298_p2), %s1457_s10, 1  ;;  %s1731_s15 = smov (!%p298_p2), 127  }
   0x6   : > { %301 = sbr.rel (%p298_p2) target bundleno = 1167 (0x48f), region = 56  ;;  %s1732_s16 = smov (!%p298_p2), 109  }
   0x7   : > { %s1733_s17 = smov (!%p298_p2), 110   ;;  %s1735_s23 = smov (!%p298_p2), 108  }
   0x8   : > { %s1736_s24 = smov (!%p298_p2), 92   ;;  %s1737_s27 = smov (!%p298_p2), 126  }
   0x9   : > { %s1739_s12 = smov (!%p298_p2), 19   ;;  %s1740_s13 = smov (!%p298_p2), 91  }
   0xb   : > { %s2076_s10 = smov (!%p338_p3, %s1457_s10), 1  ;;  %vm376_vm0 = vcmask 551936   ;;  %vm369_vm1 = vcmask 1043456   ;;  %vm389_vm2 = vcmask 900096   ;;  %vm357_vm3 = vcmask 863928   ;;  %v425_v11 = vld [vmem:[%s2067_s4] sm:$0xff] }
   0xc   : > { %s1701_s11 = smul.u32 12, %s2076_s10  ;;  %v1734_v16 = vmov 0   ;;  %vm406_vm4 = vcmask 1039360   ;;  %vm371_vm5 = vcmask 891904   ;;  %v416_v43 = vld [vmem:[%s2066_s3] sm:$0xf] }
   0xd   : > { %1721 = vset.pattern.permute.xlu0 %v1734_v16  ;;  %358 = vst.msk [vmem:[#allocation3 + $0x8] sm:$0xf] %vm357_vm3, %v1734_v16  ;;  %1722 = vset.pattern.permute.xlu1 %v1734_v16  ;;  %vm463_vm6 = vcmask 261120   ;;  %v1864_v50 = vld [vmem:[%s2063_s0] sm:$0x7]  ;;  %vm616_vm7 = vcmask 883712  }
   0xe   : > { %s342_s14 = scalar_lea.vmem %s2064_s1, %s1701_s11  ;;  %s1822_s20 = scalar_lea.vmem %s2065_s2, %s1701_s11  ;;  %v507_v52 = vperm.slane %v1864_v50, 0  ;;  %v508_v54 = vperm.slane %v1864_v50, 1  ;;  %v509_v58 = vperm.slane %v1864_v50, 2  ;;  %vm355_vm8 = vcmask 150528  }
   0xf   : > { %v395_v0 = vld [vmem:[%s342_s14] sm:$0xff]  ;;  %v413_v1 = vld [vmem:[%s342_s14 + $0x8] sm:$0xf]  ;;  %s1738_s11 = smov 90   ;;  %vm633_vm9 = vcmask 752640   ;;  %vm567_vm10 = vcmask 1031168  }
  0x10   : > { %414 = vst [vmem:[#allocation2 + $0x24] sm:$0xff] %v395_v0  ;;  %399 = vrot.lane.b32.xlu0 %v395_v0, %s1731_s15  ;;  %363 = vrot.lane.b32.xlu1 %v395_v0, %s1732_s16  ;;  %v396_v2 = vld [vmem:[%s342_s14 + $0x8] sm:$0xf]  ;;  %v1828_v12 = vld [vmem:[%s1822_s20] sm:$0xff]  ;;  %vm530_vm11 = vcmask 1043608   ;;  %vm531_vm12 = vcmask 1047556  }
  0x11   : > { %415 = vst.msk [vmem:[#allocation2 + $0x2c] sm:$0xf] %vm376_vm0, %v413_v1  ;;  %382 = vrot.lane.b32.xlu2 %v395_v0, %s1733_s17  ;;  %v360_v3 = vld [vmem:[%s342_s14 + $0x8] sm:$0xf]  ;;  %vm525_vm13 = vcmask 154624   ;;  %vm1905_vm14 = vmor %vm531_vm12, %vm530_vm11  ;;  %vm534_vm15 = vcmask 707584  }
  0x12   : > { %v379_v4 = vld [vmem:[%s342_s14 + $0x8] sm:$0xf]  ;;  %675 = vst [vmem:[#allocation2 + $0x6c] sm:$0xff] %v1828_v12  ;;  %vm650_vm3 = vcmask 744448   ;;  %s1702_s22 = smul.u32 24, %s2076_s10 }
  0x13   : > { %v742_v13 = vld [vmem:[%s1822_s20 + $0x8] sm:$0xf]  ;;  %356 = vst.msk [vmem:[#allocation3] sm:$0xf] %vm355_vm8, %v1734_v16  ;;  %vm998_vm8 = vcmask 130048  }
  0x14   : > { %v758_v17 = vld [vmem:[%s1822_s20 + $0x8] sm:$0xf]  ;;  %s352_s25 = scalar_lea.vmem %s2072_s9, %s1702_s22 }
  0x15   : > { %v710_v29 = vld [vmem:[%s1822_s20 + $0x8] sm:$0xf] }
  0x16   : > { %v726_v48 = vld [vmem:[%s1822_s20 + $0x8] sm:$0xf] }
  0x17   : > { %v1660_v34 = vld [vmem:[#allocation2 + $0x20] sm:$0xf0]  ;;  %v1481_v35 = vld [vmem:[#allocation2 + $0x24] sm:$0xf0] }
  0x18   : > { %401 = vrot.lane.b32.xlu0 %v396_v2, %s1731_s15  ;;  %365 = vrot.lane.b32.xlu1 %v360_v3, %s1732_s16  ;;  %v1661_v28 = vld [vmem:[#allocation2 + $0x28] sm:$0xf0]  ;;  %v694_v49 = vld [vmem:[%s1822_s20 + $0x8] sm:$0xf] }
  0x19   : > { %384 = vrot.lane.b32.xlu2 %v379_v4, %s1733_s17 }
  0x20   : > { %745 = vrot.lane.b32.xlu1 %v1828_v12, %s1735_s23  ;;  %428 = vperm.xlu0 %1721, %v425_v11  }
  0x21   : > { %747 = vrot.lane.b32.xlu2 %v742_v13, %s1735_s23 }
  0x28   : > { %763 = vrot.lane.b32.xlu1 %v758_v17, %s1736_s24  ;;  %761 = vrot.lane.b32.xlu0 %v1828_v12, %s1736_s24 }
  0x29   : > { %713 = vrot.lane.b32.xlu2 %v1828_v12, %s1733_s17 }
  0x30   : > { %715 = vrot.lane.b32.xlu0 %v710_v29, %s1733_s17 }
  0x31   : > { %731 = vrot.lane.b32.xlu2 %v726_v48, %s1732_s16 }
  0x38   : > { %681 = vrot.lane.b32.xlu0 %v1828_v12, %s1731_s15 }
  0x40   : > { %699 = vrot.lane.b32.xlu0 %v694_v49, %s1737_s27 }
  0x48   : > { %793 = vrot.lane.b32.xlu0 %v1828_v12, %s1738_s11 }
  0x6b   : > { %v383_v5 = vpop.permute.xlu2 %382 }
  0x6c   : > { %v386_v6 = vrot.slane %v383_v5, 4 }
  0x73   : > { %v385_v7 = vpop.permute.xlu2 %384 }
  0x74   : > { %v387_v8 = vrot.slane %v385_v7, 4  ;;  %394 = vst.msk [vmem:[#allocation2 + $0x14] sm:$0xf] %vm376_vm0, %v385_v7  ;;  %v774_v7 = vld [vmem:[%s1822_s20 + $0x8] sm:$0xf] }
  0x76   : > { %v388_v9 = vsel %vm369_vm1, %v386_v6, %v387_v8  ;;  %v678_v6 = vld [vmem:[%s1822_s20 + $0x8] sm:$0xf] }
  0x77   : > { %v390_v10 = vsel %vm389_vm2, %v383_v5, %v388_v9 }
  0x78   : > { %393 = vst [vmem:[#allocation2 + $0xc] sm:$0xff] %v390_v10 }
  0x7b   : > { %v1658_v33 = vld [vmem:[#allocation2 + $0x10] sm:$0xf0]  ;;  %v748_v3 = vpop.permute.xlu2 %747 }
  0x7c   : > { %756 = vst.msk [vmem:[#allocation2 + $0xb0] sm:$0xf] %vm376_vm0, %v748_v3  ;;  %v750_v8 = vrot.slane %v748_v3, 4 }
  0x7f   : > { %v1657_v44 = vld [vmem:[#allocation2 + $0x8] sm:$0xf0]  ;;  %v1469_v46 = vld [vmem:[#allocation2 + $0xc] sm:$0xf0] }
  0x82   : > { %v400_v14 = vpop.permute.xlu0 %399  ;;  %v364_v15 = vpop.permute.xlu1 %363 }
  0x83   : > { %v403_v20 = vrot.slane %v400_v14, 4  ;;  %v367_v21 = vrot.slane %v364_v15, 4 }
  0x8a   : > { %v402_v18 = vpop.permute.xlu0 %401  ;;  %v366_v19 = vpop.permute.xlu1 %365 }
  0x8b   : > { %v404_v22 = vrot.slane %v402_v18, 4  ;;  %411 = vst.msk [vmem:[#allocation2 + $0x20] sm:$0xf] %vm376_vm0, %v402_v18  ;;  %v368_v23 = vrot.slane %v366_v19, 4 }
  0x8c   : > { %377 = vst.msk [vmem:[#allocation2 + $0x8] sm:$0xf] %vm376_vm0, %v366_v19 }
  0x8d   : > { %v405_v24 = vsel %vm369_vm1, %v403_v20, %v404_v22  ;;  %v370_v25 = vsel %vm369_vm1, %v367_v21, %v368_v23 }
  0x8e   : > { %v407_v26 = vsel %vm406_vm4, %v400_v14, %v405_v24  ;;  %v372_v27 = vsel %vm371_vm5, %v364_v15, %v370_v25  ;;  %v790_v14 = vld [vmem:[%s1822_s20 + $0x8] sm:$0xf]  ;;  %v714_v15 = vpop.permute.xlu2 %713 }
  0x8f   : > { %410 = vst [vmem:[#allocation2 + $0x18] sm:$0xff] %v407_v26  ;;  %v717_v23 = vrot.slane %v714_v15, 4 }
  0x90   : > { %375 = vst [vmem:[#allocation2] sm:$0xff] %v372_v27 }
  0x92   : > { %v1487_v30 = vld [vmem:[#allocation2 + $0x20] sm:$0xf]  ;;  %v429_v51 = vpop.permute.xlu0 %428  ;;  %v746_v9 = vpop.permute.xlu1 %745 }
  0x93   : > { %v1488_v31 = vor.u32 %v1661_v28, %v1487_v30  ;;  %v1475_v32 = vld [vmem:[#allocation2 + $0x8] sm:$0xf]  ;;  %v749_v10 = vrot.slane %v746_v9, 4 }
  0x94   : > { %v1476_v38 = vor.u32 %v1658_v33, %v1475_v32 }
  0x95   : > { %499 = vmatpush.bf16.msra.mxu2 %v1488_v31  ;;  %v751_v11 = vsel %vm369_vm1, %v749_v10, %v750_v8 }
  0x96   : > { %v1479_v36 = vld [vmem:[#allocation2 + $0x18] sm:$0xf]  ;;  %v1659_v37 = vld [vmem:[#allocation2 + $0x1c] sm:$0xf]  ;;  %v752_v13 = vsel %vm616_vm7, %v746_v9, %v751_v11  ;;  %v732_v17 = vpop.permute.xlu2 %731 }
  0x97   : > { %v1480_v39 = vor.u32 %v1660_v34, %v1479_v36  ;;  %v1484_v40 = vor.u32 %v1659_v37, %v1481_v35  ;;  %v1467_v41 = vld [vmem:[#allocation2] sm:$0xf]  ;;  %v1656_v42 = vld [vmem:[#allocation2 + $0x4] sm:$0xf]  ;;  %755 = vst [vmem:[#allocation2 + $0xa8] sm:$0xff] %v752_v13  ;;  %v734_v48 = vrot.slane %v732_v17, 4 }
  0x98   : > { %v1468_v45 = vor.u32 %v1657_v44, %v1467_v41  ;;  %v1472_v47 = vor.u32 %v1656_v42, %v1469_v46  ;;  %740 = vst.msk [vmem:[#allocation2 + $0xa4] sm:$0xf] %vm376_vm0, %v732_v17 }
  0x99   : > { %473 = vmatpush.bf16.msra.mxu0 %v1480_v39  ;;  %486 = vmatpush.bf16.msra.mxu1 %v1484_v40 }
  0x9a   : > { %500 = vmatpush.bf16.msra.mxu2 %v1476_v38  ;;  %v762_v18 = vpop.permute.xlu0 %761  ;;  %v764_v19 = vpop.permute.xlu1 %763 }
  0x9b   : > { %v765_v20 = vrot.slane %v762_v18, 4  ;;  %v766_v21 = vrot.slane %v764_v19, 4  ;;  %772 = vst.msk [vmem:[#allocation2 + $0xbc] sm:$0xf] %vm376_vm0, %v764_v19 }
  0x9d   : > { %1491 = vmatmul.msk.bf16.vlgmr.msra.gmra.mxu2 %vm463_vm6, %v416_v43  ;;  %474 = vmatpush.bf16.msra.mxu0 %v1468_v45 }
  0x9e   : > { %487 = vmatpush.bf16.msra.mxu1 %v1472_v47  ;;  %v1578_v26 = vld [vmem:[#allocation2 + $0xa8] sm:$0xf]  ;;  %v1683_v27 = vld [vmem:[#allocation2 + $0xac] sm:$0xf] }
  0xa0   : > { %1489 = vmatmul.msk.bf16.vlgmr.msra.gmra.mxu0 %vm463_vm6, %v416_v43 }
  0xa1   : > { %1490 = vmatmul.msk.bf16.vlgmr.msra.gmra.mxu1 %vm463_vm6, %v416_v43  ;;  %vm667_vm6 = vcmask 736256  }
  0xa2   : > { %v716_v24 = vpop.permute.xlu0 %715 }
  0xa3   : > { %v718_v25 = vrot.slane %v716_v24, 4  ;;  %724 = vst.msk [vmem:[#allocation2 + $0x98] sm:$0xf] %vm376_vm0, %v716_v24 }
  0xa5   : > { %v719_v28 = vsel %vm369_vm1, %v717_v23, %v718_v25  ;;  %v1586_v25 = vld [vmem:[#allocation2 + $0xb0] sm:$0xf] }
  0xa6   : > { %v720_v29 = vsel %vm389_vm2, %v714_v15, %v719_v28 }
  0xa7   : > { %723 = vst [vmem:[#allocation2 + $0x90] sm:$0xff] %v720_v29 }
  0xaa   : > { %v682_v33 = vpop.permute.xlu0 %681 }
  0xae   : > { %v1680_v3 = vld [vmem:[#allocation2 + $0x94] sm:$0xf] }
  0xb2   : > { %v700_v35 = vpop.permute.xlu0 %699 }
  0xb3   : > { %v702_v37 = vrot.slane %v700_v35, 4  ;;  %708 = vst.msk [vmem:[#allocation2 + $0x8c] sm:$0xf] %vm376_vm0, %v700_v35 }
  0xba   : > { %v1679_v35 = vld [vmem:[#allocation2 + $0x88] sm:$0xf0] }
 0x11d   : > { %v476_v53 = vpop.f32.mrf.mxu0 }
 0x11e   : > { %v477_v55 = vadd.f32 %v476_v53, %v429_v51  ;;  %v489_v56 = vpop.f32.mrf.mxu1 }
 0x11f   : > { %v490_v57 = vadd.f32 %v489_v56, %v429_v51 }
 0x120   : > { %v513_v59 = vmul.f32 %v507_v52, %v477_v55  ;;  %v502_v60 = vpop.f32.mrf.mxu2 }
 0x121   : > { %v514_v61 = vmul.f32 %v508_v54, %v490_v57  ;;  %v503_v62 = vadd.f32 %v502_v60, %v429_v51 }
 0x123   : > { %v515_v63 = vmul.f32 %v509_v58, %v503_v62  ;;  %v516_v0 = vpack.c.bf16 %v514_v61, %v513_v59  ;;  %v685_v59 = vrot.slane %v682_v33, 4 }
 0x125   : > { %v517_v1 = vpack.c.bf16 %v515_v63, %v515_v63  ;;  %520 = vrot.lane.b32.xlu1 %v516_v0, %s1739_s12  ;;  %v478_v2 = vpop.f32.mrf.mxu0 }
 0x126   : > { %v491_v4 = vpop.f32.mrf.mxu1  ;;  %v1566_v2 = vld [vmem:[#allocation2 + $0x90] sm:$0xf] }
 0x127   : > { %522 = vrot.lane.b32.xlu2 %v517_v1, %s1739_s12 }
 0x128   : > { %v504_v5 = vpop.f32.mrf.mxu2 }
 0x12d   : > { %729 = vrot.lane.b32.xlu1 %v1828_v12, %s1732_s16 }
 0x12f   : > { %697 = vrot.lane.b32.xlu2 %v1828_v12, %s1737_s27 }
 0x135   : > { %683 = vrot.lane.b32.xlu1 %v678_v6, %s1731_s15 }
 0x137   : > { %779 = vrot.lane.b32.xlu2 %v774_v7, %s1740_s13 }
 0x13d   : > { %777 = vrot.lane.b32.xlu1 %v1828_v12, %s1740_s13  ;;  %v767_v12 = vsel %vm369_vm1, %v765_v20, %v766_v21 }
 0x13e   : > { %v768_v22 = vsel %vm633_vm9, %v762_v18, %v767_v12 }
 0x13f   : > { %771 = vst [vmem:[#allocation2 + $0xb4] sm:$0xff] %v768_v22 }
 0x145   : > { %795 = vrot.lane.b32.xlu1 %v790_v14, %s1738_s11  ;;  %v794_v14 = vpop.permute.xlu0 %793 }
 0x146   : > { %v1684_v30 = vld [vmem:[#allocation2 + $0xb0] sm:$0xf0]  ;;  %v1580_v31 = vld [vmem:[#allocation2 + $0xb4] sm:$0xf0]  ;;  %v797_v17 = vrot.slane %v794_v14, 4 }
 0x147   : > { %v1579_v16 = vor.u32 %v1684_v30, %v1578_v26  ;;  %v1583_v32 = vor.u32 %v1683_v27, %v1580_v31  ;;  %v1685_v26 = vld [vmem:[#allocation2 + $0xb8] sm:$0xf0]  ;;  %v1574_v30 = vld [vmem:[#allocation2 + $0x98] sm:$0xf]  ;;  %v1682_v31 = vld [vmem:[#allocation2 + $0xa0] sm:$0xf0] }
 0x148   : > { %v1587_v29 = vor.u32 %v1685_v26, %v1586_v25 }
 0x149   : > { %1002 = vmatpush.bf16.msra.mxu3 %v1579_v16  ;;  %1028 = vmatpush.bf16.msrb.mxu1 %v1583_v32  ;;  %v842_v16 = vld [vmem:[%s2069_s6] sm:$0xff]  ;;  %v1575_v32 = vor.u32 %v1682_v31, %v1574_v30 }
 0x181   : > { %v523_v34 = vpop.permute.xlu2 %522 }
 0x189   : > { %v698_v36 = vpop.permute.xlu2 %697 }
 0x18a   : > { %v701_v38 = vrot.slane %v698_v36, 4 }
 0x18c   : > { %v703_v39 = vsel %vm369_vm1, %v701_v38, %v702_v37  ;;  %v674_v37 = vld [vmem:[%s1822_s20 + $0x8] sm:$0xf] }
 0x18d   : > { %v704_v40 = vsel %vm567_vm10, %v698_v36, %v703_v39  ;;  %676 = vst.msk [vmem:[#allocation2 + $0x74] sm:$0xf] %vm376_vm0, %v674_v37 }
 0x18e   : > { %707 = vst [vmem:[#allocation2 + $0x84] sm:$0xff] %v704_v40 }
 0x191   : > { %v780_v44 = vpop.permute.xlu2 %779 }
 0x192   : > { %788 = vst.msk [vmem:[#allocation2 + $0xc8] sm:$0xf] %vm376_vm0, %v780_v44  ;;  %v782_v8 = vrot.slane %v780_v44, 4 }
 0x195   : > { %v1678_v39 = vld [vmem:[#allocation2 + $0x80] sm:$0xf0] }
 0x197   : > { %v521_v41 = vpop.permute.xlu1 %520 }
 0x198   : > { %v524_v43 = vrot.slane %v521_v41, 4 }
 0x19a   : > { %v526_v45 = vsel %vm525_vm13, %v524_v43, %v521_v41  ;;  %v527_v46 = vsel %vm525_vm13, %v524_v43, %v523_v34  ;;  %v1556_v43 = vld [vmem:[#allocation2 + $0x84] sm:$0xf0] }
 0x19b   : > { %533 = vst.msk [vmem:[#allocation3] sm:$0xff] %vm1905_vm14, %v526_v45 }
 0x19c   : > { %535 = vst.msk [vmem:[#allocation3 + $0x8] sm:$0xf] %vm534_vm15, %v527_v46 }
 0x19f   : > { %v730_v47 = vpop.permute.xlu1 %729 }
 0x1a0   : > { %v733_v49 = vrot.slane %v730_v47, 4 }
 0x1a2   : > { %v536_v51 = vld [vmem:[#allocation3] sm:$0xff]  ;;  %v735_v53 = vsel %vm369_vm1, %v733_v49, %v734_v48 }
 0x1a3   : > { %v537_v55 = vld [vmem:[#allocation3 + $0x8] sm:$0xf]  ;;  %538 = vst [vmem:[#allocation2] sm:$0xff] %v536_v51  ;;  %v736_v56 = vsel %vm371_vm5, %v730_v47, %v735_v53  ;;  %660 = vrot.lane.b32.xlu1 %v536_v51, %s1738_s11  ;;  %626 = vrot.lane.b32.xlu0 %v536_v51, %s1736_s24  ;;  %v1598_v47 = vld [vmem:[#allocation2 + $0xc8] sm:$0xf] }
 0x1a4   : > { %v657_v57 = vld [vmem:[#allocation3 + $0x8] sm:$0xf]  ;;  %539 = vst.msk [vmem:[#allocation2 + $0x8] sm:$0xf] %vm376_vm0, %v537_v55  ;;  %v1676_v55 = vld [vmem:[#allocation2 + $0x70] sm:$0xf0] }
 0x1a5   : > { %662 = vrot.lane.b32.xlu2 %v657_v57, %s1738_s11  ;;  %739 = vst [vmem:[#allocation2 + $0x9c] sm:$0xff] %v736_v56  ;;  %v623_v63 = vld [vmem:[#allocation3 + $0x8] sm:$0xf] }
 0x1a6   : > { %v640_v0 = vld [vmem:[#allocation3 + $0x8] sm:$0xf] }
 0x1a7   : > { %v684_v60 = vpop.permute.xlu1 %683  ;;  %v590_v11 = vld [vmem:[#allocation3 + $0x8] sm:$0xf] }
 0x1a8   : > { %v686_v61 = vrot.slane %v684_v60, 4  ;;  %692 = vst.msk [vmem:[#allocation2 + $0x80] sm:$0xf] %vm376_vm0, %v684_v60  ;;  %v557_v21 = vld [vmem:[#allocation3 + $0x8] sm:$0xf] }
 0x1a9   : > { %v606_v22 = vld [vmem:[#allocation3 + $0x8] sm:$0xf] }
 0x1aa   : > { %v687_v62 = vsel %vm369_vm1, %v685_v59, %v686_v61  ;;  %v574_v24 = vld [vmem:[#allocation3 + $0x8] sm:$0xf] }
 0x1ab   : > { %v688_v1 = vsel %vm406_vm4, %v682_v33, %v687_v62  ;;  %628 = vrot.lane.b32.xlu1 %v623_v63, %s1736_s24  ;;  %645 = vrot.lane.b32.xlu0 %v640_v0, %s1740_s13  ;;  %v541_v33 = vld [vmem:[#allocation3 + $0x8] sm:$0xf] }
 0x1ac   : > { %691 = vst [vmem:[#allocation2 + $0x78] sm:$0xff] %v688_v1  ;;  %v1681_v4 = vld [vmem:[#allocation2 + $0x98] sm:$0xf0]  ;;  %v1568_v5 = vld [vmem:[#allocation2 + $0x9c] sm:$0xf0] }
 0x1ad   : > { %643 = vrot.lane.b32.xlu2 %v536_v51, %s1740_s13  ;;  %v1567_v6 = vor.u32 %v1681_v4, %v1566_v2  ;;  %v1571_v7 = vor.u32 %v1680_v3, %v1568_v5  ;;  %v1951_v61 = vld [vmem:[%s2068_s5] sm:$0xff] }
 0x1ae   : > { %v850_v62 = vunpack.c.h.b16 %v1951_v61 }
 0x1af   : > { %1003 = vmatpush.bf16.msra.mxu3 %v1567_v6  ;;  %1029 = vmatpush.bf16.msrb.mxu1 %v1571_v7  ;;  %v778_v9 = vpop.permute.xlu1 %777  ;;  %v1562_v34 = vld [vmem:[#allocation2 + $0x80] sm:$0xf] }
 0x1b0   : > { %v781_v10 = vrot.slane %v778_v9, 4  ;;  %v1563_v36 = vor.u32 %v1679_v35, %v1562_v34  ;;  %v852_v1 = vpack.c.b16 %v850_v62, %v850_v62 }
 0x1b2   : > { %v783_v13 = vsel %vm369_vm1, %v781_v10, %v782_v8 }
 0x1b3   : > { %595 = vrot.lane.b32.xlu0 %v590_v11, %s1732_s16  ;;  %609 = vrot.lane.b32.xlu1 %v536_v51, %s1735_s23  ;;  %v784_v15 = vsel %vm650_vm3, %v778_v9, %v783_v13  ;;  %v1554_v38 = vld [vmem:[#allocation2 + $0x78] sm:$0xf]  ;;  %v1677_v41 = vld [vmem:[#allocation2 + $0x7c] sm:$0xf] }
 0x1b4   : > { %787 = vst [vmem:[#allocation2 + $0xc0] sm:$0xff] %v784_v15  ;;  %v1555_v40 = vor.u32 %v1678_v39, %v1554_v38  ;;  %v1559_v44 = vor.u32 %v1677_v41, %v1556_v43  ;;  %v1675_v15 = vld [vmem:[#allocation2 + $0x68] sm:$0xf0] }
 0x1b5   : > { %593 = vrot.lane.b32.xlu2 %v536_v51, %s1732_s16 }
 0x1b6   : > { %1004 = vmatpush.bf16.msra.mxu3 %v1555_v40  ;;  %1030 = vmatpush.bf16.msrb.mxu1 %v1559_v44 }
 0x1b7   : > { %v796_v18 = vpop.permute.xlu1 %795 }
 0x1b8   : > { %v798_v19 = vrot.slane %v796_v18, 4  ;;  %804 = vst.msk [vmem:[#allocation2 + $0xd4] sm:$0xf] %vm376_vm0, %v796_v18 }
 0x1ba   : > { %v799_v20 = vsel %vm369_vm1, %v797_v17, %v798_v19  ;;  %v1544_v17 = vld [vmem:[#allocation2 + $0x6c] sm:$0xf0] }
 0x1bb   : > { %v800_v12 = vsel %vm667_vm6, %v794_v14, %v799_v20  ;;  %562 = vrot.lane.b32.xlu1 %v557_v21, %s1737_s27  ;;  %560 = vrot.lane.b32.xlu0 %v536_v51, %s1737_s27  ;;  %v1590_v23 = vld [vmem:[#allocation2 + $0xc0] sm:$0xf]  ;;  %v1686_v45 = vld [vmem:[#allocation2 + $0xc4] sm:$0xf] }
 0x1bc   : > { %803 = vst [vmem:[#allocation2 + $0xcc] sm:$0xff] %v800_v12 }
 0x1bd   : > { %611 = vrot.lane.b32.xlu2 %v606_v22, %s1735_s23 }
 0x1bf   : > { %v1688_v49 = vld [vmem:[#allocation2 + $0xd0] sm:$0xf0] }
 0x1c3   : > { %579 = vrot.lane.b32.xlu0 %v574_v24, %s1733_s17  ;;  %544 = vrot.lane.b32.xlu1 %v536_v51, %s1731_s15  ;;  %v1687_v27 = vld [vmem:[#allocation2 + $0xc8] sm:$0xf0]  ;;  %v1592_v46 = vld [vmem:[#allocation2 + $0xcc] sm:$0xf0] }
 0x1c4   : > { %v1591_v28 = vor.u32 %v1687_v27, %v1590_v23  ;;  %v1595_v48 = vor.u32 %v1686_v45, %v1592_v46 }
 0x1c5   : > { %577 = vrot.lane.b32.xlu2 %v536_v51, %s1733_s17  ;;  %v1599_v51 = vor.u32 %v1688_v49, %v1598_v47 }
 0x1c6   : > { %1022 = vmatpush.bf16.msrb.mxu0 %v1591_v28  ;;  %1048 = vmatpush.bf16.msrb.mxu2 %v1595_v48 }
 0x1c9   : > { %1601 = vmatmul.msk.bf16.vlgmr.msrb.gmra.mxu2 %vm998_vm8, %v852_v1  ;;  %1600 = vmatmul.msk.bf16.vlgmr.msrb.gmra.mxu0 %vm998_vm8, %v852_v1 }
 0x1ca   : > { %1054 = vmatpush.bf16.msra.mxu0 %v1587_v29  ;;  %1074 = vmatpush.bf16.msra.mxu2 %v1599_v51 }
 0x1cb   : > { %845 = vperm.xlu0 %1721, %v842_v16  }
 0x1cd   : > { %546 = vrot.lane.b32.xlu2 %v541_v33, %s1731_s15 }
 0x1ce   : > { %1055 = vmatpush.bf16.msra.mxu0 %v1575_v32 }
 0x1d2   : > { %1056 = vmatpush.bf16.msra.mxu0 %v1563_v36 }
 0x1d9   : > { %1602 = vmatmul.msk.bf16.vlgmr.msra.gmra.mxu2 %vm998_vm8, %v852_v1 }
 0x1ff   : > { %v663_v53 = vpop.permute.xlu2 %662 }
 0x200   : > { %672 = vst.msk [vmem:[#allocation2 + $0x68] sm:$0xf] %vm376_vm0, %v663_v53  ;;  %v665_v2 = vrot.slane %v663_v53, 4 }
 0x207   : > { %v644_v56 = vpop.permute.xlu2 %643  ;;  %v1550_v57 = vld [vmem:[#allocation2 + $0x68] sm:$0xf] }
 0x208   : > { %v1551_v59 = vor.u32 %v1676_v55, %v1550_v57  ;;  %v647_v9 = vrot.slane %v644_v56, 4 }
 0x20a   : > { %1057 = vmatpush.bf16.msra.mxu0 %v1551_v59 }
 0x20f   : > { %v594_v60 = vpop.permute.xlu2 %593 }
 0x210   : > { %v597_v25 = vrot.slane %v594_v60, 4 }
 0x215   : > { %v627_v63 = vpop.permute.xlu0 %626  ;;  %v661_v0 = vpop.permute.xlu1 %660 }
 0x216   : > { %v664_v4 = vrot.slane %v661_v0, 4  ;;  %v630_v10 = vrot.slane %v627_v63, 4 }
 0x217   : > { %v612_v3 = vpop.permute.xlu2 %611 }
 0x218   : > { %621 = vst.msk [vmem:[#allocation2 + $0x44] sm:$0xf] %vm376_vm0, %v612_v3  ;;  %v666_v5 = vsel %vm369_vm1, %v664_v4, %v665_v2  ;;  %v614_v26 = vrot.slane %v612_v3, 4 }
 0x219   : > { %v668_v6 = vsel %vm667_vm6, %v661_v0, %v666_v5 }
 0x21a   : > { %671 = vst [vmem:[#allocation2 + $0x60] sm:$0xff] %v668_v6 }
 0x21d   : > { %v646_v7 = vpop.permute.xlu0 %645  ;;  %v629_v8 = vpop.permute.xlu1 %628 }
 0x21e   : > { %v648_v11 = vrot.slane %v646_v7, 4  ;;  %655 = vst.msk [vmem:[#allocation2 + $0x5c] sm:$0xf] %vm376_vm0, %v646_v7  ;;  %v631_v14 = vrot.slane %v629_v8, 4 }
 0x21f   : > { %v1960_v13 = vpop.permute.xlu2 %577  ;;  %638 = vst.msk [vmem:[#allocation2 + $0x50] sm:$0xf] %vm376_vm0, %v629_v8  ;;  %v1670_v48 = vld [vmem:[#allocation2 + $0x40] sm:$0xf0] }
 0x220   : > { %v649_v18 = vsel %vm369_vm1, %v647_v9, %v648_v11  ;;  %v632_v19 = vsel %vm369_vm1, %v630_v10, %v631_v14  ;;  %v581_v3 = vrot.slane %v1960_v13, 4 }
 0x221   : > { %v651_v20 = vsel %vm650_vm3, %v644_v56, %v649_v18  ;;  %v634_v21 = vsel %vm633_vm9, %v627_v63, %v632_v19  ;;  %v1542_v12 = vld [vmem:[#allocation2 + $0x60] sm:$0xf]  ;;  %v1674_v22 = vld [vmem:[#allocation2 + $0x64] sm:$0xf]  ;;  %v849_v19 = vunpack.c.l.b16 %v1951_v61 }
 0x222   : > { %654 = vst [vmem:[#allocation2 + $0x54] sm:$0xff] %v651_v20  ;;  %v1543_v23 = vor.u32 %v1675_v15, %v1542_v12  ;;  %v1547_v24 = vor.u32 %v1674_v22, %v1544_v17 }
 0x223   : > { %637 = vst [vmem:[#allocation2 + $0x48] sm:$0xff] %v634_v21 }
 0x224   : > { %1005 = vmatpush.bf16.msra.mxu3 %v1543_v23  ;;  %1031 = vmatpush.bf16.msrb.mxu1 %v1547_v24  ;;  %v1502_v24 = vld [vmem:[#allocation2 + $0x8] sm:$0xf] }
 0x225   : > { %v596_v27 = vpop.permute.xlu0 %595  ;;  %v610_v28 = vpop.permute.xlu1 %609  ;;  %v1673_v29 = vld [vmem:[#allocation2 + $0x58] sm:$0xf0] }
 0x226   : > { %v598_v30 = vrot.slane %v596_v27, 4  ;;  %604 = vst.msk [vmem:[#allocation2 + $0x38] sm:$0xf] %vm376_vm0, %v596_v27  ;;  %v613_v16 = vrot.slane %v610_v28, 4  ;;  %v1538_v32 = vld [vmem:[#allocation2 + $0x50] sm:$0xf] }
 0x227   : > { %v547_v31 = vpop.permute.xlu2 %546  ;;  %v1539_v33 = vor.u32 %v1673_v29, %v1538_v32 }
 0x228   : > { %555 = vst.msk [vmem:[#allocation2 + $0x14] sm:$0xf] %vm376_vm0, %v547_v31  ;;  %v599_v34 = vsel %vm369_vm1, %v597_v25, %v598_v30  ;;  %v615_v35 = vsel %vm369_vm1, %v613_v16, %v614_v26  ;;  %v549_v4 = vrot.slane %v547_v31, 4  ;;  %v851_v26 = vpack.c.b16 %v849_v19, %v849_v19  ;;  %v1662_v30 = vld [vmem:[#allocation2 + $0x4] sm:$0xf] }
 0x229   : > { %v600_v36 = vsel %vm371_vm5, %v594_v60, %v599_v34  ;;  %v617_v37 = vsel %vm616_vm7, %v610_v28, %v615_v35  ;;  %1058 = vmatpush.bf16.msra.mxu0 %v1539_v33  ;;  %v1672_v38 = vld [vmem:[#allocation2 + $0x50] sm:$0xf0]  ;;  %v1532_v39 = vld [vmem:[#allocation2 + $0x54] sm:$0xf0]  ;;  %v1494_v28 = vld [vmem:[#allocation2] sm:$0xf] }
 0x22a   : > { %603 = vst [vmem:[#allocation2 + $0x30] sm:$0xff] %v600_v36  ;;  %v1530_v40 = vld [vmem:[#allocation2 + $0x48] sm:$0xf]  ;;  %v1671_v41 = vld [vmem:[#allocation2 + $0x4c] sm:$0xf] }
 0x22b   : > { %620 = vst [vmem:[#allocation2 + $0x3c] sm:$0xff] %v617_v37  ;;  %v1531_v43 = vor.u32 %v1672_v38, %v1530_v40  ;;  %v1535_v44 = vor.u32 %v1671_v41, %v1532_v39 }
 0x22d   : > { %1006 = vmatpush.bf16.msra.mxu3 %v1531_v43  ;;  %1032 = vmatpush.bf16.msrb.mxu1 %v1535_v44  ;;  %v561_v45 = vpop.permute.xlu0 %560  ;;  %v563_v46 = vpop.permute.xlu1 %562  ;;  %v1526_v47 = vld [vmem:[#allocation2 + $0x38] sm:$0xf] }
 0x22e   : > { %v564_v49 = vrot.slane %v561_v45, 4  ;;  %v565_v51 = vrot.slane %v563_v46, 4  ;;  %572 = vst.msk [vmem:[#allocation2 + $0x20] sm:$0xf] %vm376_vm0, %v563_v46  ;;  %v1527_v53 = vor.u32 %v1670_v48, %v1526_v47 }
 0x22f   : > { %v1664_v18 = vld [vmem:[#allocation2 + $0x10] sm:$0xf0] }
 0x230   : > { %v566_v55 = vsel %vm369_vm1, %v564_v49, %v565_v51  ;;  %1059 = vmatpush.bf16.msra.mxu0 %v1527_v53  ;;  %v1503_v25 = vor.u32 %v1664_v18, %v1502_v24 }
 0x231   : > { %v568_v56 = vsel %vm567_vm10, %v561_v45, %v566_v55  ;;  %v1518_v57 = vld [vmem:[#allocation2 + $0x30] sm:$0xf]  ;;  %v1668_v59 = vld [vmem:[#allocation2 + $0x34] sm:$0xf] }
 0x232   : > { %571 = vst [vmem:[#allocation2 + $0x18] sm:$0xff] %v568_v56  ;;  %v1669_v60 = vld [vmem:[#allocation2 + $0x38] sm:$0xf0]  ;;  %v1520_v62 = vld [vmem:[#allocation2 + $0x3c] sm:$0xf0] }
 0x233   : > { %v1519_v63 = vor.u32 %v1669_v60, %v1518_v57  ;;  %v1523_v0 = vor.u32 %v1668_v59, %v1520_v62 }
 0x235   : > { %1007 = vmatpush.bf16.msra.mxu3 %v1519_v63  ;;  %1033 = vmatpush.bf16.msrb.mxu1 %v1523_v0  ;;  %v580_v1 = vpop.permute.xlu0 %579  ;;  %v545_v2 = vpop.permute.xlu1 %544  ;;  %v1514_v11 = vld [vmem:[#allocation2 + $0x20] sm:$0xf] }
 0x236   : > { %v582_v5 = vrot.slane %v580_v1, 4  ;;  %588 = vst.msk [vmem:[#allocation2 + $0x2c] sm:$0xf] %vm376_vm0, %v580_v1  ;;  %v548_v6 = vrot.slane %v545_v2, 4 }
 0x238   : > { %v583_v7 = vsel %vm369_vm1, %v581_v3, %v582_v5  ;;  %v550_v8 = vsel %vm369_vm1, %v548_v6, %v549_v4 }
 0x239   : > { %v584_v9 = vsel %vm389_vm2, %v1960_v13, %v583_v7  ;;  %v551_v10 = vsel %vm406_vm4, %v545_v2, %v550_v8  ;;  %v1506_v17 = vld [vmem:[#allocation2 + $0x18] sm:$0xf]  ;;  %v1665_v21 = vld [vmem:[#allocation2 + $0x1c] sm:$0xf] }
 0x23a   : > { %587 = vst [vmem:[#allocation2 + $0x24] sm:$0xff] %v584_v9 }
 0x23b   : > { %554 = vst [vmem:[#allocation2 + $0xc] sm:$0xff] %v551_v10 }
 0x23d   : > { %v1667_v14 = vld [vmem:[#allocation2 + $0x28] sm:$0xf0]  ;;  %v846_v36 = vpop.permute.xlu0 %845 }
 0x23e   : > { %v1515_v15 = vor.u32 %v1667_v14, %v1514_v11 }
 0x240   : > { %1060 = vmatpush.bf16.msra.mxu0 %v1515_v15 }
 0x241   : > { %v1666_v20 = vld [vmem:[#allocation2 + $0x20] sm:$0xf0]  ;;  %v1508_v12 = vld [vmem:[#allocation2 + $0x24] sm:$0xf0] }
 0x242   : > { %v1507_v22 = vor.u32 %v1666_v20, %v1506_v17  ;;  %v1511_v23 = vor.u32 %v1665_v21, %v1508_v12  ;;  %v1663_v13 = vld [vmem:[#allocation2 + $0x8] sm:$0xf0]  ;;  %v1496_v27 = vld [vmem:[#allocation2 + $0xc] sm:$0xf0] }
 0x243   : > { %v1495_v29 = vor.u32 %v1663_v13, %v1494_v28  ;;  %v1499_v31 = vor.u32 %v1662_v30, %v1496_v27 }
 0x244   : > { %1008 = vmatpush.bf16.msra.mxu3 %v1507_v22  ;;  %1034 = vmatpush.bf16.msrb.mxu1 %v1511_v23 }
 0x245   : > { %1061 = vmatpush.bf16.msra.mxu0 %v1503_v25 }
 0x246   : > { %v1024_v61 = vpop.f32.mrf.mxu0 }
 0x248   : > { %1062 = vmatmul.bf16.vlgmr.msra.gmra.mxu0 %v851_v26  ;;  %1009 = vmatpush.bf16.msra.mxu3 %v1495_v29 }
 0x249   : > { %1035 = vmatpush.bf16.msrb.mxu1 %v1499_v31 }
 0x24b   : > { %1010 = vmatmul.bf16.vlgmr.msra.gmra.mxu3 %v851_v26 }
 0x24c   : > { %1036 = vmatmul.bf16.vlgmr.msrb.gmra.mxu1 %v851_v26  ;;  %v1050_v16 = vpop.f32.mrf.mxu2 }
 0x24e   : > { %v1026_v32 = vpop.f32.mrf.mxu0 }
 0x254   : > { %v1052_v33 = vpop.f32.mrf.mxu2 }
 0x25c   : > { %v1076_v34 = vpop.f32.mrf.mxu2 }
 0x264   : > { %v1078_v35 = vpop.f32.mrf.mxu2 }
 0x2c5   : > { %v1063_v37 = vpop.f32.mrf.mxu0 }
 0x2c6   : > { %v1064_v38 = vadd.f32 %v1063_v37, %v846_v36 }
 0x2c8   : > { %v1077_v39 = vadd.f32 %v1076_v34, %v1064_v38 }
 0x2c9   : > { %v1037_v40 = vpop.f32.mrf.mxu1 }
 0x2ca   : > { %v1082_v41 = vmax.f32 %v1077_v39, 0.0  ;;  %v1038_v43 = vadd.f32 %v1037_v40, %v846_v36 }
 0x2cc   : > { %v1085_v44 = vmul.f32 %v1082_v41, %v509_v58  ;;  %v1051_v45 = vadd.f32 %v1050_v16, %v1038_v43 }
 0x2cd   : > { %v1065_v46 = vpop.f32.mrf.mxu0 }
 0x2ce   : > { %v1087_v47 = vpack.c.bf16 %v1085_v44, %v1085_v44  ;;  %v1011_v48 = vpop.f32.mrf.mxu3  ;;  %v1081_v51 = vmax.f32 %v1051_v45, 0.0 }
 0x2cf   : > { %v1012_v49 = vadd.f32 %v1011_v48, %v846_v36 }
 0x2d0   : > { %1092 = vrot.lane.b32.xlu2 %v1087_v47, %s1739_s12  ;;  %v1084_v57 = vmul.f32 %v1081_v51, %v508_v54 }
 0x2d1   : > { %v1025_v53 = vadd.f32 %v1024_v61, %v1012_v49  ;;  %v1039_v55 = vpop.f32.mrf.mxu1 }
 0x2d3   : > { %v1080_v56 = vmax.f32 %v1025_v53, 0.0 }
 0x2d5   : > { %v1083_v59 = vmul.f32 %v1080_v56, %v507_v52 }
 0x2d6   : > { %v1013_v60 = vpop.f32.mrf.mxu3 }
 0x2d7   : > { %v1086_v62 = vpack.c.bf16 %v1084_v57, %v1083_v59 }
 0x2d9   : > { %1090 = vrot.lane.b32.xlu1 %v1086_v62, %s1739_s12 }
 0x32a   : > { %v1093_v0 = vpop.permute.xlu2 %1092 }
 0x34b   : > { %v1091_v58 = vpop.permute.xlu1 %1090 }
 0x34c   : > { %v1094_v63 = vrot.slane %v1091_v58, 4 }
 0x34e   : > { %v1095_v1 = vsel %vm525_vm13, %v1094_v63, %v1091_v58  ;;  %v1096_v2 = vsel %vm525_vm13, %v1094_v63, %v1093_v0  ;;  %v1252_v0 = vld [vmem:[%s2071_s8] sm:$0xff] }
 0x34f   : > { %1099 = vst.msk [vmem:[#allocation3] sm:$0xff] %vm1905_vm14, %v1095_v1 }
 0x350   : > { %1100 = vst.msk [vmem:[#allocation3 + $0x8] sm:$0xf] %vm534_vm15, %v1096_v2 }
 0x356   : > { %v1217_v54 = vld [vmem:[#allocation3] sm:$0xff] }
 0x357   : > { %v1218_v3 = vld [vmem:[#allocation3 + $0x8] sm:$0xf]  ;;  %1221 = vrot.lane.b32.xlu0 %v1217_v54, %s1738_s11  ;;  %1189 = vrot.lane.b32.xlu2 %v1217_v54, %s1736_s24  ;;  %1103 = vst [vmem:[#allocation2] sm:$0xff] %v1217_v54 }
 0x358   : > { %1223 = vrot.lane.b32.xlu1 %v1218_v3, %s1738_s11  ;;  %v1102_v50 = vld [vmem:[#allocation3 + $0x8] sm:$0xf] }
 0x359   : > { %1104 = vst.msk [vmem:[#allocation2 + $0x8] sm:$0xf] %vm376_vm0, %v1102_v50  ;;  %v1186_v52 = vld [vmem:[#allocation3 + $0x8] sm:$0xf] }
 0x35a   : > { %v1202_v4 = vld [vmem:[#allocation3 + $0x8] sm:$0xf] }
 0x35b   : > { %v1154_v42 = vld [vmem:[#allocation3 + $0x8] sm:$0xf] }
 0x35c   : > { %v1122_v5 = vld [vmem:[#allocation3 + $0x8] sm:$0xf] }
 0x35d   : > { %v1170_v6 = vld [vmem:[#allocation3 + $0x8] sm:$0xf] }
 0x35e   : > { %v1138_v7 = vld [vmem:[#allocation3 + $0x8] sm:$0xf] }
 0x35f   : > { %1191 = vrot.lane.b32.xlu0 %v1186_v52, %s1736_s24  ;;  %1207 = vrot.lane.b32.xlu2 %v1202_v4, %s1740_s13  ;;  %v1106_v8 = vld [vmem:[#allocation3 + $0x8] sm:$0xf] }
 0x360   : > { %1205 = vrot.lane.b32.xlu1 %v1217_v54, %s1740_s13 }
 0x367   : > { %1173 = vrot.lane.b32.xlu2 %v1217_v54, %s1735_s23  ;;  %1157 = vrot.lane.b32.xlu0 %v1217_v54, %s1732_s16 }
 0x368   : > { %1159 = vrot.lane.b32.xlu1 %v1154_v42, %s1732_s16 }
 0x36f   : > { %1127 = vrot.lane.b32.xlu2 %v1122_v5, %s1737_s27  ;;  %1175 = vrot.lane.b32.xlu0 %v1170_v6, %s1735_s23 }
 0x370   : > { %1125 = vrot.lane.b32.xlu1 %v1217_v54, %s1737_s27 }
 0x377   : > { %1141 = vrot.lane.b32.xlu0 %v1217_v54, %s1733_s17  ;;  %1109 = vrot.lane.b32.xlu2 %v1217_v54, %s1731_s15 }
 0x378   : > { %1143 = vrot.lane.b32.xlu1 %v1138_v7, %s1733_s17 }
 0x37f   : > { %1111 = vrot.lane.b32.xlu0 %v1106_v8, %s1731_s15 }
 0x380   : > { %1255 = vperm.xlu1 %1722, %v1252_v0  }
 0x3b1   : > { %v1190_v9 = vpop.permute.xlu2 %1189 }
 0x3b2   : > { %v1193_v23 = vrot.slane %v1190_v9, 4 }
 0x3b9   : > { %v1208_v10 = vpop.permute.xlu2 %1207 }
 0x3ba   : > { %1216 = vst.msk [vmem:[#allocation2 + $0x5c] sm:$0xf] %vm376_vm0, %v1208_v10  ;;  %v1210_v26 = vrot.slane %v1208_v10, 4 }
 0x3c1   : > { %v2016_v11 = vpop.permute.xlu2 %1173  ;;  %v1700_v40 = vld [vmem:[#allocation2 + $0x58] sm:$0xf0] }
 0x3c2   : > { %v1177_v59 = vrot.slane %v2016_v11, 4 }
 0x3c9   : > { %v1222_v14 = vpop.permute.xlu0 %1221  ;;  %v2018_v15 = vpop.permute.xlu2 %1127 }
 0x3ca   : > { %v1224_v17 = vpop.permute.xlu1 %1223  ;;  %v1225_v18 = vrot.slane %v1222_v14, 4  ;;  %1136 = vst.msk [vmem:[#allocation2 + $0x20] sm:$0xf] %vm376_vm0, %v2018_v15  ;;  %v1130_v58 = vrot.slane %v2018_v15, 4 }
 0x3cb   : > { %v1226_v19 = vrot.slane %v1224_v17, 4  ;;  %1232 = vst.msk [vmem:[#allocation2 + $0x68] sm:$0xf] %vm376_vm0, %v1224_v17 }
 0x3cd   : > { %v1227_v20 = vsel %vm369_vm1, %v1225_v18, %v1226_v19 }
 0x3ce   : > { %v1228_v21 = vsel %vm667_vm6, %v1222_v14, %v1227_v20 }
 0x3cf   : > { %1231 = vst [vmem:[#allocation2 + $0x60] sm:$0xff] %v1228_v21  ;;  %v1300_v12 = vunpack.c.l.b16 %v1228_v21  ;;  %v1301_v22 = vunpack.c.h.b16 %v1228_v21 }
 0x3d1   : > { %v1192_v24 = vpop.permute.xlu0 %1191  ;;  %v1315_v25 = vpack.c.b16 %v1300_v12, %v1300_v12  ;;  %v1316_v13 = vpack.c.b16 %v1301_v22, %v1301_v22  ;;  %v1110_v19 = vpop.permute.xlu2 %1109  ;;  %v1625_v21 = vld [vmem:[#allocation2 + $0x20] sm:$0xf] }
 0x3d2   : > { %v1194_v27 = vrot.slane %v1192_v24, 4  ;;  %1200 = vst.msk [vmem:[#allocation2 + $0x50] sm:$0xf] %vm376_vm0, %v1192_v24  ;;  %v1206_v28 = vpop.permute.xlu1 %1205  ;;  %v1251_v29 = vld [vmem:[#allocation2 + $0x68] sm:$0xf]  ;;  %v1113_v12 = vrot.slane %v1110_v19, 4 }
 0x3d3   : > { %v1209_v30 = vrot.slane %v1206_v28, 4  ;;  %v1302_v31 = vunpack.c.l.b16 %v1251_v29  ;;  %v1336_v61 = vsel %vm369_vm1, %v1315_v25, 0  ;;  %v1339_v16 = vsel %vm369_vm1, %v1316_v13, 0 }
 0x3d4   : > { %v1195_v32 = vsel %vm369_vm1, %v1193_v23, %v1194_v27  ;;  %1347 = vmatpush.bf16.msrb.mxu3 %v1336_v61  ;;  %1360 = vmatpush.bf16.msra.mxu1 %v1339_v16  ;;  %v1613_v61 = vld [vmem:[#allocation2 + $0x8] sm:$0xf] }
 0x3d5   : > { %v1196_v33 = vsel %vm633_vm9, %v1190_v9, %v1195_v32  ;;  %v1211_v34 = vsel %vm369_vm1, %v1209_v30, %v1210_v26  ;;  %v1317_v35 = vpack.c.b16 %v1302_v31, %v1302_v31 }
 0x3d6   : > { %1199 = vst [vmem:[#allocation2 + $0x48] sm:$0xff] %v1196_v33  ;;  %v1212_v36 = vsel %vm650_vm3, %v1206_v28, %v1211_v34  ;;  %v1233_v33 = vld [vmem:[%s2070_s7] sm:$0xf] }
 0x3d7   : > { %1215 = vst [vmem:[#allocation2 + $0x54] sm:$0xff] %v1212_v36  ;;  %v1342_v37 = vsel %vm369_vm1, %v1317_v35, 0  ;;  %v1605_v34 = vld [vmem:[#allocation2] sm:$0xf]  ;;  %v1689_v36 = vld [vmem:[#allocation2 + $0x4] sm:$0xf] }
 0x3d8   : > { %1373 = vmatpush.bf16.msrb.mxu2 %v1342_v37 }
 0x3d9   : > { %v1158_v38 = vpop.permute.xlu0 %1157  ;;  %v1649_v39 = vld [vmem:[#allocation2 + $0x50] sm:$0xf] }
 0x3da   : > { %v1160_v41 = vpop.permute.xlu1 %1159  ;;  %v1161_v43 = vrot.slane %v1158_v38, 4  ;;  %v1650_v44 = vor.u32 %v1700_v40, %v1649_v39 }
 0x3db   : > { %v1162_v45 = vrot.slane %v1160_v41, 4  ;;  %1168 = vst.msk [vmem:[#allocation2 + $0x38] sm:$0xf] %vm376_vm0, %v1160_v41 }
 0x3dc   : > { %1374 = vmatpush.bf16.msrb.mxu2 %v1650_v44 }
 0x3dd   : > { %v1163_v46 = vsel %vm369_vm1, %v1161_v43, %v1162_v45  ;;  %v1641_v47 = vld [vmem:[#allocation2 + $0x48] sm:$0xf]  ;;  %v1698_v48 = vld [vmem:[#allocation2 + $0x4c] sm:$0xf] }
 0x3de   : > { %v1164_v49 = vsel %vm371_vm5, %v1158_v38, %v1163_v46  ;;  %v1699_v51 = vld [vmem:[#allocation2 + $0x50] sm:$0xf0]  ;;  %v1643_v53 = vld [vmem:[#allocation2 + $0x54] sm:$0xf0] }
 0x3df   : > { %1167 = vst [vmem:[#allocation2 + $0x30] sm:$0xff] %v1164_v49  ;;  %v1642_v55 = vor.u32 %v1699_v51, %v1641_v47  ;;  %v1646_v56 = vor.u32 %v1698_v48, %v1643_v53 }
 0x3e1   : > { %1348 = vmatpush.bf16.msrb.mxu3 %v1642_v55  ;;  %1361 = vmatpush.bf16.msra.mxu1 %v1646_v56  ;;  %v1176_v57 = vpop.permute.xlu0 %1175 }
 0x3e2   : > { %v1178_v60 = vrot.slane %v1176_v57, 4  ;;  %1184 = vst.msk [vmem:[#allocation2 + $0x44] sm:$0xf] %vm376_vm0, %v1176_v57  ;;  %v1126_v62 = vpop.permute.xlu1 %1125  ;;  %v1637_v52 = vld [vmem:[#allocation2 + $0x38] sm:$0xf] }
 0x3e3   : > { %v1129_v63 = vrot.slane %v1126_v62, 4 }
 0x3e4   : > { %v1179_v1 = vsel %vm369_vm1, %v1177_v59, %v1178_v60 }
 0x3e5   : > { %v1180_v2 = vsel %vm616_vm7, %v2016_v11, %v1179_v1  ;;  %v1131_v54 = vsel %vm369_vm1, %v1129_v63, %v1130_v58 }
 0x3e6   : > { %1183 = vst [vmem:[#allocation2 + $0x3c] sm:$0xff] %v1180_v2  ;;  %v1132_v3 = vsel %vm567_vm10, %v1126_v62, %v1131_v54  ;;  %v1629_v8 = vld [vmem:[#allocation2 + $0x30] sm:$0xf]  ;;  %v1695_v11 = vld [vmem:[#allocation2 + $0x34] sm:$0xf] }
 0x3e7   : > { %1135 = vst [vmem:[#allocation2 + $0x18] sm:$0xff] %v1132_v3 }
 0x3e9   : > { %v1142_v50 = vpop.permute.xlu0 %1141  ;;  %v1697_v4 = vld [vmem:[#allocation2 + $0x40] sm:$0xf0] }
 0x3ea   : > { %v1145_v42 = vrot.slane %v1142_v50, 4  ;;  %v1144_v5 = vpop.permute.xlu1 %1143  ;;  %v1638_v6 = vor.u32 %v1697_v4, %v1637_v52 }
 0x3eb   : > { %v1146_v7 = vrot.slane %v1144_v5, 4  ;;  %1152 = vst.msk [vmem:[#allocation2 + $0x2c] sm:$0xf] %vm376_vm0, %v1144_v5 }
 0x3ec   : > { %1375 = vmatpush.bf16.msrb.mxu2 %v1638_v6 }
 0x3ed   : > { %v1147_v9 = vsel %vm369_vm1, %v1145_v42, %v1146_v7  ;;  %v1696_v10 = vld [vmem:[#allocation2 + $0x38] sm:$0xf0]  ;;  %v1631_v14 = vld [vmem:[#allocation2 + $0x3c] sm:$0xf0] }
 0x3ee   : > { %v1148_v15 = vsel %vm389_vm2, %v1142_v50, %v1147_v9  ;;  %v1630_v17 = vor.u32 %v1696_v10, %v1629_v8  ;;  %v1634_v18 = vor.u32 %v1695_v11, %v1631_v14  ;;  %v1617_v26 = vld [vmem:[#allocation2 + $0x18] sm:$0xf]  ;;  %v1692_v27 = vld [vmem:[#allocation2 + $0x1c] sm:$0xf] }
 0x3ef   : > { %1151 = vst [vmem:[#allocation2 + $0x24] sm:$0xff] %v1148_v15 }
 0x3f0   : > { %1349 = vmatpush.bf16.msrb.mxu3 %v1630_v17  ;;  %1362 = vmatpush.bf16.msra.mxu1 %v1634_v18 }
 0x3f1   : > { %v1112_v20 = vpop.permute.xlu0 %1111 }
 0x3f2   : > { %v1114_v22 = vrot.slane %v1112_v20, 4  ;;  %1120 = vst.msk [vmem:[#allocation2 + $0x14] sm:$0xf] %vm376_vm0, %v1112_v20  ;;  %v1694_v23 = vld [vmem:[#allocation2 + $0x28] sm:$0xf0]  ;;  %vm1330_vm0 = vcmask 588800   ;;  %v1256_v40 = vpop.permute.xlu1 %1255 }
 0x3f3   : > { %v1626_v24 = vor.u32 %v1694_v23, %v1625_v21 }
 0x3f4   : > { %v1115_v25 = vsel %vm369_vm1, %v1113_v12, %v1114_v22  ;;  %vm1388_vm1 = vcmask 556032  }
 0x3f5   : > { %v1116_v13 = vsel %vm406_vm4, %v1110_v19, %v1115_v25  ;;  %1376 = vmatpush.bf16.msrb.mxu2 %v1626_v24 }
 0x3f6   : > { %1119 = vst [vmem:[#allocation2 + $0xc] sm:$0xff] %v1116_v13  ;;  %v1693_v28 = vld [vmem:[#allocation2 + $0x20] sm:$0xf0]  ;;  %v1619_v29 = vld [vmem:[#allocation2 + $0x24] sm:$0xf0] }
 0x3f7   : > { %v1618_v30 = vor.u32 %v1693_v28, %v1617_v26  ;;  %v1622_v31 = vor.u32 %v1692_v27, %v1619_v29 }
 0x3f9   : > { %1350 = vmatpush.bf16.msrb.mxu3 %v1618_v30  ;;  %1363 = vmatpush.bf16.msra.mxu1 %v1622_v31  ;;  %v1691_v16 = vld [vmem:[#allocation2 + $0x10] sm:$0xf0] }
 0x3fa   : > { %v1614_v32 = vor.u32 %v1691_v16, %v1613_v61 }
 0x3fc   : > { %1377 = vmatpush.bf16.msrb.mxu2 %v1614_v32 }
 0x3fd   : > { %v1690_v35 = vld [vmem:[#allocation2 + $0x8] sm:$0xf0]  ;;  %v1607_v37 = vld [vmem:[#allocation2 + $0xc] sm:$0xf0] }
 0x3fe   : > { %v1606_v38 = vor.u32 %v1690_v35, %v1605_v34  ;;  %v1610_v39 = vor.u32 %v1689_v36, %v1607_v37 }
 0x3ff   : > { %1653 = vmatmul.msk.bf16.vlgmr.msrb.gmra.mxu2 %vm1330_vm0, %v1233_v33 }
 0x400   : > { %1351 = vmatpush.bf16.msrb.mxu3 %v1606_v38  ;;  %1364 = vmatpush.bf16.msra.mxu1 %v1610_v39 }
 0x403   : > { %1651 = vmatmul.msk.bf16.vlgmr.msrb.gmra.mxu3 %vm1330_vm0, %v1233_v33  ;;  %1652 = vmatmul.msk.bf16.vlgmr.msra.gmra.mxu1 %vm1330_vm0, %v1233_v33 }
 0x480   : > { %v1366_v41 = vpop.f32.mrf.mxu1 }
 0x481   : > { %v1367_v43 = vadd.f32 %v1366_v41, %v1256_v40 }
 0x482   : > { %v1379_v44 = vpop.f32.mrf.mxu2 }
 0x483   : > { %v1380_v45 = vadd.f32 %v1379_v44, %v1256_v40  ;;  %v1384_v46 = vmax.f32 %v1367_v43, 0.0 }
 0x485   : > { %v1385_v47 = vmax.f32 %v1380_v45, 0.0  ;;  %1387 = vst [vmem:[%s352_s25 + $0x8] sm:$0xff] %v1384_v46 }
 0x486   : > { %v1353_v48 = vpop.f32.mrf.mxu3 }
 0x487   : > { %1389 = vst.msk [vmem:[%s352_s25 + $0x10] sm:$0xff] %vm1388_vm1, %v1385_v47  ;;  %v1354_v49 = vadd.f32 %v1353_v48, %v1256_v40 }
 0x488   : > { %v1368_v51 = vpop.f32.mrf.mxu1 }
 0x489   : > { %v1383_v53 = vmax.f32 %v1354_v49, 0.0 }
 0x48a   : > { %v1381_v55 = vpop.f32.mrf.mxu2 }
 0x48b   : > { %1386 = vst [vmem:[%s352_s25] sm:$0xff] %v1383_v53 }
 0x48e   : > { %v1355_v56 = vpop.f32.mrf.mxu3 }
 0x48f PF: > { %s19_s30 = sadd.s32 1, %s1729_s30  }
 0x490   : > { %p16_p4 = scmp.ge.s32.totalorder %s19_s30, 4  }
 0x492   :  { %18 = sbr.rel (!%p16_p4) target bundleno = 1 (0x1), region = 89 }

</bundles_post_ra>
